<compile_context>
chip_gen: v7x
topology: tpu7x:2x2x1
jax: 0.10.0
libtpu: 0.0.40
codegen_flags: <defaults>
</compile_context>

<pallas_src>
import jax
import jax.numpy as jnp
from jax.experimental import pallas as pl
from jax.experimental.pallas import tpu as pltpu


# ------------------------------ fused Pallas kernel ------------------------------

def cnn_fused_kernel(p1_ref, w1_ref, b1_ref, s1_ref, t1_ref,
                     w2_ref, b2_ref, s2_ref, t2_ref,
                     w3_ref, b3_ref, s3_ref, t3_ref,
                     w4_ref, b4_ref, o_ref):
    f32 = jnp.float32
    TB = p1_ref.shape[1]          # batch tile (multiple of 8)

    # ---- Conv1 (1->64, 3x3 'same') as one im2col GEMM: (36*TB, 9) @ (9, 64) ----
    # p1_ref block is position-major (36, TB, 9); TB % 8 == 0 makes this reshape a
    # layout-preserving collapse of the leading dims.
    p1 = p1_ref[...].reshape(36 * TB, 9)
    h1 = jnp.dot(p1, w1_ref[...], preferred_element_type=f32)
    y1 = jnp.maximum(h1 + b1_ref[...], 0.0) * s1_ref[...] + t1_ref[...]   # ReLU -> BN affine

    # ---- MaxPool1 2x2 (6x7 -> 3x3; column 6 is dropped by floor pooling and was
    #      never computed: only the 6x6 grid of conv1 outputs is in p1) ----
    def chunk(arr, p):                       # rows of output position p (static slice)
        return arr[p * TB:(p + 1) * TB, :]

    pooled = [[None] * 3 for _ in range(3)]
    for pi in range(3):
        for pj in range(3):
            a = chunk(y1, (2 * pi) * 6 + 2 * pj)
            b = chunk(y1, (2 * pi) * 6 + 2 * pj + 1)
            c = chunk(y1, (2 * pi + 1) * 6 + 2 * pj)
            d = chunk(y1, (2 * pi + 1) * 6 + 2 * pj + 1)
            pooled[pi][pj] = jnp.maximum(jnp.maximum(a, b), jnp.maximum(c, d))   # (TB, 64)

    # ---- Conv2 (64->128, 3x3 'same' on the 3x3 map) fused with MaxPool2 ----
    # Only output positions (0,0),(0,1),(1,0),(1,1) survive MaxPool2d(2) on a 3x3 map,
    # so compute exactly those, stacked along M: 9 tap GEMMs of (4*TB,64)@(64,128).
    zero_blk = jnp.zeros((TB, 64), f32)      # 'same'-padding ring
    acc2 = jnp.zeros((4 * TB, 128), f32)
    for ky in range(3):
        for kx in range(3):
            blocks = []
            for di in range(2):
                for dj in range(2):
                    r, c = ky + di - 1, kx + dj - 1
                    blocks.append(pooled[r][c] if (0 <= r <= 2 and 0 <= c <= 2) else zero_blk)
            lhs = jnp.concatenate(blocks, axis=0)                         # (4*TB, 64)
            acc2 = acc2 + jnp.dot(lhs, w2_ref[ky * 3 + kx],
                                  preferred_element_type=f32)
    y2 = jnp.maximum(acc2 + b2_ref[...], 0.0) * s2_ref[...] + t2_ref[...]
    feat = jnp.maximum(jnp.maximum(y2[0:TB], y2[TB:2 * TB]),
                       jnp.maximum(y2[2 * TB:3 * TB], y2[3 * TB:]))       # (TB, 128)

    # ---- FC1 (128->256) + ReLU + BN1d ----
    h3 = jnp.dot(feat, w3_ref[...], preferred_element_type=f32) + b3_ref[...]
    h3 = jnp.maximum(h3, 0.0) * s3_ref[...] + t3_ref[...]

    # ---- FC2 (256 -> 128 lane-padded classes) + Softmax(dim=1) ----
    logits = jnp.dot(h3, w4_ref[...], preferred_element_type=f32) + b4_ref[...]
    m = jnp.max(logits, axis=-1, keepdims=True)
    e = jnp.exp(logits - m)
    s = jnp.sum(e, axis=-1, keepdims=True)
    r = pl.reciprocal(s, approx=True)
    r = r * (2.0 - s * r)                    # one Newton step -> ~f32 accurate
    o_ref[...] = e * r


# ------------------------------ wrapper / glue ------------------------------

def _round_up(x, m):
    return ((x + m - 1) // m) * m


def _build_patches1(x_hw, n_pad):
    # x_hw: (N, 6, 7). Position-major 3x3 'same' patches for the 36 conv1 outputs that
    # survive MaxPool2d(2) (rows 0..5, cols 0..5) -> (36, n_pad, 9). Tiny (1.3 KB/sample).
    N = x_hw.shape[0]
    if n_pad != N:
        x_hw = jnp.concatenate([x_hw, jnp.zeros((n_pad - N, 6, 7), x_hw.dtype)], axis=0)
    xpad = jnp.pad(x_hw, ((0, 0), (1, 1), (1, 1)))                                # (n_pad, 8, 9)
    slabs = jnp.stack([xpad[:, ky:ky + 6, kx:kx + 6]
                       for ky in range(3) for kx in range(3)], axis=-1)           # (n_pad, 6, 6, 9)
    return jnp.transpose(slabs.reshape(n_pad, 36, 9), (1, 0, 2))                  # (36, n_pad, 9)


def cnn_forward(x_nchw, p, block_batch=64):
    # x_nchw: (N, 1, 6, 7) float32 (PyTorch NCHW convention).
    N = x_nchw.shape[0]
    x_hw = x_nchw[:, 0].astype(jnp.float32)          # Cin == 1
    TB = min(block_batch, _round_up(max(N, 1), 8))   # batch tile, multiple of 8
    n_pad = _round_up(N, TB)
    patches1 = _build_patches1(x_hw, n_pad)

    out = pl.pallas_call(
        cnn_fused_kernel,
        out_shape=jax.ShapeDtypeStruct((n_pad, 128), jnp.float32),
        grid=(n_pad // TB,),
        in_specs=[pl.BlockSpec((36, TB, 9), lambda b: (0, b, 0))]       # batch-tiled patches
                 + [pl.BlockSpec(memory_space=pltpu.MemorySpace.VMEM)] * 14,   # resident weights
        out_specs=pl.BlockSpec((TB, 128), lambda b: (b, 0)),
        compiler_params=pltpu.CompilerParams(
            dimension_semantics=("parallel",),
            vmem_limit_bytes=32 * 1024 * 1024),
    )(patches1,
      p["w1"], p["b1"], p["s1"], p["t1"],
      p["w2"], p["b2"], p["s2"], p["t2"],
      p["w3"], p["b3"], p["s3"], p["t3"],
      p["w4p"], p["b4p"])
    return out[:N, :p["num_classes"]]


# ------------------------------ params ------------------------------

def bn_affine(gamma, beta, mean, var, eps=1e-5):
    scale = gamma / jnp.sqrt(var + eps)
    shift = beta - mean * scale
    return scale, shift


def init_params(key, num_classes):
    ks = jax.random.split(key, 16)
    f32 = jnp.float32

    def bn_params(k, c):
        k1, k2, k3, k4 = jax.random.split(k, 4)
        gamma = 1.0 + 0.1 * jax.random.normal(k1, (c,), f32)
        beta = 0.1 * jax.random.normal(k2, (c,), f32)
        mean = 0.1 * jax.random.normal(k3, (c,), f32)
        var = jax.random.uniform(k4, (c,), f32, 0.5, 1.5)
        s, t = bn_affine(gamma, beta, mean, var)
        return s.reshape(1, c), t.reshape(1, c)

    p = {"num_classes": num_classes}
    # conv1: 1 -> 64, 3x3 'same'; GEMM layout (ky*3+kx, cout)
    p["w1"] = 0.1 * jax.random.normal(ks[0], (9, 64), f32)
    p["b1"] = 0.1 * jax.random.normal(ks[1], (1, 64), f32)
    p["s1"], p["t1"] = bn_params(ks[2], 64)
    # conv2: 64 -> 128, 3x3 'same'; per-tap (cin, cout)
    p["w2"] = 0.05 * jax.random.normal(ks[3], (9, 64, 128), f32)
    p["b2"] = 0.1 * jax.random.normal(ks[4], (1, 128), f32)
    p["s2"], p["t2"] = bn_params(ks[5], 128)
    # fc1: 128 -> 256
    p["w3"] = 0.05 * jax.random.normal(ks[6], (128, 256), f32)
    p["b3"] = 0.1 * jax.random.normal(ks[7], (1, 256), f32)
    p["s3"], p["t3"] = bn_params(ks[8], 256)
    # fc2: 256 -> num_classes, lane-padded to 128 (padded logits get -1e30 bias -> prob 0)
    w4 = 0.05 * jax.random.normal(ks[9], (256, num_classes), f32)
    b4 = 0.1 * jax.random.normal(ks[10], (1, num_classes), f32)
    p["w4p"] = jnp.zeros((256, 128), f32).at[:, :num_classes].set(w4)
    p["b4p"] = jnp.full((1, 128), -1e30, f32).at[:, :num_classes].set(b4)
    return p


# ------------------------------ pure-JAX reference ------------------------------

def cnn_forward_ref(x_nchw, p):
    hp = jax.lax.Precision.HIGHEST
    N = x_nchw.shape[0]
    x = x_nchw[:, 0].astype(jnp.float32)
    xpad = jnp.pad(x, ((0, 0), (1, 1), (1, 1)))
    h1 = jnp.zeros((N, 6, 7, 64), jnp.float32)
    for ky in range(3):
        for kx in range(3):
            h1 = h1 + xpad[:, ky:ky + 6, kx:kx + 7, None] * p["w1"][ky * 3 + kx][None, None, None, :]
    y1 = jnp.maximum(h1 + p["b1"].reshape(1, 1, 1, 64), 0.0)
    y1 = y1 * p["s1"].reshape(1, 1, 1, 64) + p["t1"].reshape(1, 1, 1, 64)
    y1 = y1[:, :6, :6, :].reshape(N, 3, 2, 3, 2, 64).max(axis=(2, 4))       # MaxPool 2x2
    y1p = jnp.pad(y1, ((0, 0), (1, 1), (1, 1), (0, 0)))
    h2 = jnp.zeros((N, 3, 3, 128), jnp.float32)
    for ky in range(3):
        for kx in range(3):
            h2 = h2 + jnp.einsum('nijc,cd->nijd', y1p[:, ky:ky + 3, kx:kx + 3, :],
                                 p["w2"][ky * 3 + kx], precision=hp)
    y2 = jnp.maximum(h2 + p["b2"].reshape(1, 1, 1, 128), 0.0)
    y2 = y2 * p["s2"].reshape(1, 1, 1, 128) + p["t2"].reshape(1, 1, 1, 128)
    f = y2[:, :2, :2, :].max(axis=(1, 2))                                   # MaxPool 2x2 -> (N,128)
    h3 = jnp.dot(f, p["w3"], precision=hp) + p["b3"]
    h3 = jnp.maximum(h3, 0.0) * p["s3"] + p["t3"]
    nc = p["num_classes"]
    logits = jnp.dot(h3, p["w4p"][:, :nc], precision=hp) + p["b4p"][0, :nc]
    return jax.nn.softmax(logits, axis=-1)


if __name__ == "__main__":
    num_classes = 7
    key = jax.random.PRNGKey(0)
    kp, kx = jax.random.split(key)
    params = init_params(kp, num_classes)

    x = jax.random.normal(kx, (2, 1, 6, 7), jnp.float32)           # NCHW like PyTorch
    fwd = jax.jit(lambda inp: cnn_forward(inp, params))
    out = jax.block_until_ready(fwd(x))

    ref = cnn_forward_ref(x, params)

    assert out.shape == (2, num_classes)
    assert bool(jnp.all(jnp.isfinite(out)))
    assert bool(jnp.all(jnp.abs(jnp.sum(out, axis=1) - 1.0) < 1e-4))   # softmax rows sum to 1
    assert bool(jnp.max(jnp.abs(out - ref)) < 1e-3)                    # matches pure-JAX reference
    # TODO(synk): train-mode Dropout / batch-statistics BatchNorm not modeled (eval-mode forward).
    print("KERNEL_OK")
</pallas_src>

<mosaic_0001>
module attributes {stable_mosaic.version = 11 : i64} {
  func.func @cnn_fused_kernel(%arg0: i32, %arg1: memref<36x8x9xf32, #tpu.memory_space<vmem>>, %arg2: memref<9x64xf32, #tpu.memory_space<vmem>>, %arg3: memref<1x64xf32, #tpu.memory_space<vmem>>, %arg4: memref<1x64xf32, #tpu.memory_space<vmem>>, %arg5: memref<1x64xf32, #tpu.memory_space<vmem>>, %arg6: memref<9x64x128xf32, #tpu.memory_space<vmem>>, %arg7: memref<1x128xf32, #tpu.memory_space<vmem>>, %arg8: memref<1x128xf32, #tpu.memory_space<vmem>>, %arg9: memref<1x128xf32, #tpu.memory_space<vmem>>, %arg10: memref<128x256xf32, #tpu.memory_space<vmem>>, %arg11: memref<1x256xf32, #tpu.memory_space<vmem>>, %arg12: memref<1x256xf32, #tpu.memory_space<vmem>>, %arg13: memref<1x256xf32, #tpu.memory_space<vmem>>, %arg14: memref<256x128xf32, #tpu.memory_space<vmem>>, %arg15: memref<1x128xf32, #tpu.memory_space<vmem>>, %arg16: memref<8x128xf32, #tpu.memory_space<vmem>>) attributes {dimension_semantics = [#tpu.dimension_semantics<parallel>], iteration_bounds = array<i64: 1>, scalar_prefetch = 0 : i64, scratch_operands = 0 : i64, tpu.core_type = #tpu.core_type<tc>, window_params = [{transform_indices = @transform_0, window_bounds = array<i64: 36, 8, 9>}, {pipeline_mode = #tpu.pipeline_mode<synchronous>, transform_indices = @transform_1, window_bounds = array<i64: 9, 64>}, {pipeline_mode = #tpu.pipeline_mode<synchronous>, transform_indices = @transform_2, window_bounds = array<i64: 1, 64>}, {pipeline_mode = #tpu.pipeline_mode<synchronous>, transform_indices = @transform_3, window_bounds = array<i64: 1, 64>}, {pipeline_mode = #tpu.pipeline_mode<synchronous>, transform_indices = @transform_4, window_bounds = array<i64: 1, 64>}, {pipeline_mode = #tpu.pipeline_mode<synchronous>, transform_indices = @transform_5, window_bounds = array<i64: 9, 64, 128>}, {pipeline_mode = #tpu.pipeline_mode<synchronous>, transform_indices = @transform_6, window_bounds = array<i64: 1, 128>}, {pipeline_mode = #tpu.pipeline_mode<synchronous>, transform_indices = @transform_7, window_bounds = array<i64: 1, 128>}, {pipeline_mode = #tpu.pipeline_mode<synchronous>, transform_indices = @transform_8, window_bounds = array<i64: 1, 128>}, {pipeline_mode = #tpu.pipeline_mode<synchronous>, transform_indices = @transform_9, window_bounds = array<i64: 128, 256>}, {pipeline_mode = #tpu.pipeline_mode<synchronous>, transform_indices = @transform_10, window_bounds = array<i64: 1, 256>}, {pipeline_mode = #tpu.pipeline_mode<synchronous>, transform_indices = @transform_11, window_bounds = array<i64: 1, 256>}, {pipeline_mode = #tpu.pipeline_mode<synchronous>, transform_indices = @transform_12, window_bounds = array<i64: 1, 256>}, {pipeline_mode = #tpu.pipeline_mode<synchronous>, transform_indices = @transform_13, window_bounds = array<i64: 256, 128>}, {pipeline_mode = #tpu.pipeline_mode<synchronous>, transform_indices = @transform_14, window_bounds = array<i64: 1, 128>}, {transform_indices = @transform_15, window_bounds = array<i64: 8, 128>}]} {
    %c0 = arith.constant 0 : index
    %c0_0 = arith.constant 0 : index
    %c0_1 = arith.constant 0 : index
    %0 = vector.load %arg1[%c0, %c0_0, %c0_1] : memref<36x8x9xf32, #tpu.memory_space<vmem>>, vector<36x8x9xf32>
    %1 = vector.shape_cast %0 : vector<36x8x9xf32> to vector<288x9xf32>
    %c0_2 = arith.constant 0 : index
    %c0_3 = arith.constant 0 : index
    %2 = vector.load %arg2[%c0_2, %c0_3] : memref<9x64xf32, #tpu.memory_space<vmem>>, vector<9x64xf32>
    %cst = arith.constant dense<0.000000e+00> : vector<288x64xf32>
    %3 = tpu.matmul %1, %2, %cst {dimension_numbers = #tpu.dot_dimension_numbers<[1], [0], [0], [1], [0, 0, 1, 1], [], []>} : vector<288x9xf32>, vector<9x64xf32>, vector<288x64xf32> -> vector<288x64xf32>
    %c0_4 = arith.constant 0 : index
    %c0_5 = arith.constant 0 : index
    %4 = vector.load %arg3[%c0_4, %c0_5] : memref<1x64xf32, #tpu.memory_space<vmem>>, vector<1x64xf32>
    %5 = vector.broadcast %4 : vector<1x64xf32> to vector<288x64xf32>
    %6 = arith.addf %3, %5 : vector<288x64xf32>
    %cst_6 = arith.constant 0.000000e+00 : f32
    %7 = vector.broadcast %cst_6 : f32 to vector<288x64xf32>
    %8 = arith.maximumf %6, %7 : vector<288x64xf32>
    %c0_7 = arith.constant 0 : index
    %c0_8 = arith.constant 0 : index
    %9 = vector.load %arg4[%c0_7, %c0_8] : memref<1x64xf32, #tpu.memory_space<vmem>>, vector<1x64xf32>
    %10 = vector.broadcast %9 : vector<1x64xf32> to vector<288x64xf32>
    %11 = arith.mulf %8, %10 : vector<288x64xf32>
    %c0_9 = arith.constant 0 : index
    %c0_10 = arith.constant 0 : index
    %12 = vector.load %arg5[%c0_9, %c0_10] : memref<1x64xf32, #tpu.memory_space<vmem>>, vector<1x64xf32>
    %13 = vector.broadcast %12 : vector<1x64xf32> to vector<288x64xf32>
    %14 = arith.addf %11, %13 : vector<288x64xf32>
    %15 = vector.extract_strided_slice %14 {offsets = [0, 0], sizes = [8, 64], strides = [1, 1]} : vector<288x64xf32> to vector<8x64xf32>
    %16 = vector.extract_strided_slice %14 {offsets = [8, 0], sizes = [8, 64], strides = [1, 1]} : vector<288x64xf32> to vector<8x64xf32>
    %17 = vector.extract_strided_slice %14 {offsets = [48, 0], sizes = [8, 64], strides = [1, 1]} : vector<288x64xf32> to vector<8x64xf32>
    %18 = vector.extract_strided_slice %14 {offsets = [56, 0], sizes = [8, 64], strides = [1, 1]} : vector<288x64xf32> to vector<8x64xf32>
    %19 = arith.maximumf %15, %16 : vector<8x64xf32>
    %20 = arith.maximumf %17, %18 : vector<8x64xf32>
    %21 = arith.maximumf %19, %20 : vector<8x64xf32>
    %22 = vector.extract_strided_slice %14 {offsets = [16, 0], sizes = [8, 64], strides = [1, 1]} : vector<288x64xf32> to vector<8x64xf32>
    %23 = vector.extract_strided_slice %14 {offsets = [24, 0], sizes = [8, 64], strides = [1, 1]} : vector<288x64xf32> to vector<8x64xf32>
    %24 = vector.extract_strided_slice %14 {offsets = [64, 0], sizes = [8, 64], strides = [1, 1]} : vector<288x64xf32> to vector<8x64xf32>
    %25 = vector.extract_strided_slice %14 {offsets = [72, 0], sizes = [8, 64], strides = [1, 1]} : vector<288x64xf32> to vector<8x64xf32>
    %26 = arith.maximumf %22, %23 : vector<8x64xf32>
    %27 = arith.maximumf %24, %25 : vector<8x64xf32>
    %28 = arith.maximumf %26, %27 : vector<8x64xf32>
    %29 = vector.extract_strided_slice %14 {offsets = [32, 0], sizes = [8, 64], strides = [1, 1]} : vector<288x64xf32> to vector<8x64xf32>
    %30 = vector.extract_strided_slice %14 {offsets = [40, 0], sizes = [8, 64], strides = [1, 1]} : vector<288x64xf32> to vector<8x64xf32>
    %31 = vector.extract_strided_slice %14 {offsets = [80, 0], sizes = [8, 64], strides = [1, 1]} : vector<288x64xf32> to vector<8x64xf32>
    %32 = vector.extract_strided_slice %14 {offsets = [88, 0], sizes = [8, 64], strides = [1, 1]} : vector<288x64xf32> to vector<8x64xf32>
    %33 = arith.maximumf %29, %30 : vector<8x64xf32>
    %34 = arith.maximumf %31, %32 : vector<8x64xf32>
    %35 = arith.maximumf %33, %34 : vector<8x64xf32>
    %36 = vector.extract_strided_slice %14 {offsets = [96, 0], sizes = [8, 64], strides = [1, 1]} : vector<288x64xf32> to vector<8x64xf32>
    %37 = vector.extract_strided_slice %14 {offsets = [104, 0], sizes = [8, 64], strides = [1, 1]} : vector<288x64xf32> to vector<8x64xf32>
    %38 = vector.extract_strided_slice %14 {offsets = [144, 0], sizes = [8, 64], strides = [1, 1]} : vector<288x64xf32> to vector<8x64xf32>
    %39 = vector.extract_strided_slice %14 {offsets = [152, 0], sizes = [8, 64], strides = [1, 1]} : vector<288x64xf32> to vector<8x64xf32>
    %40 = arith.maximumf %36, %37 : vector<8x64xf32>
    %41 = arith.maximumf %38, %39 : vector<8x64xf32>
    %42 = arith.maximumf %40, %41 : vector<8x64xf32>
    %43 = vector.extract_strided_slice %14 {offsets = [112, 0], sizes = [8, 64], strides = [1, 1]} : vector<288x64xf32> to vector<8x64xf32>
    %44 = vector.extract_strided_slice %14 {offsets = [120, 0], sizes = [8, 64], strides = [1, 1]} : vector<288x64xf32> to vector<8x64xf32>
    %45 = vector.extract_strided_slice %14 {offsets = [160, 0], sizes = [8, 64], strides = [1, 1]} : vector<288x64xf32> to vector<8x64xf32>
    %46 = vector.extract_strided_slice %14 {offsets = [168, 0], sizes = [8, 64], strides = [1, 1]} : vector<288x64xf32> to vector<8x64xf32>
    %47 = arith.maximumf %43, %44 : vector<8x64xf32>
    %48 = arith.maximumf %45, %46 : vector<8x64xf32>
    %49 = arith.maximumf %47, %48 : vector<8x64xf32>
    %50 = vector.extract_strided_slice %14 {offsets = [128, 0], sizes = [8, 64], strides = [1, 1]} : vector<288x64xf32> to vector<8x64xf32>
    %51 = vector.extract_strided_slice %14 {offsets = [136, 0], sizes = [8, 64], strides = [1, 1]} : vector<288x64xf32> to vector<8x64xf32>
    %52 = vector.extract_strided_slice %14 {offsets = [176, 0], sizes = [8, 64], strides = [1, 1]} : vector<288x64xf32> to vector<8x64xf32>
    %53 = vector.extract_strided_slice %14 {offsets = [184, 0], sizes = [8, 64], strides = [1, 1]} : vector<288x64xf32> to vector<8x64xf32>
    %54 = arith.maximumf %50, %51 : vector<8x64xf32>
    %55 = arith.maximumf %52, %53 : vector<8x64xf32>
    %56 = arith.maximumf %54, %55 : vector<8x64xf32>
    %57 = vector.extract_strided_slice %14 {offsets = [192, 0], sizes = [8, 64], strides = [1, 1]} : vector<288x64xf32> to vector<8x64xf32>
    %58 = vector.extract_strided_slice %14 {offsets = [200, 0], sizes = [8, 64], strides = [1, 1]} : vector<288x64xf32> to vector<8x64xf32>
    %59 = vector.extract_strided_slice %14 {offsets = [240, 0], sizes = [8, 64], strides = [1, 1]} : vector<288x64xf32> to vector<8x64xf32>
    %60 = vector.extract_strided_slice %14 {offsets = [248, 0], sizes = [8, 64], strides = [1, 1]} : vector<288x64xf32> to vector<8x64xf32>
    %61 = arith.maximumf %57, %58 : vector<8x64xf32>
    %62 = arith.maximumf %59, %60 : vector<8x64xf32>
    %63 = arith.maximumf %61, %62 : vector<8x64xf32>
    %64 = vector.extract_strided_slice %14 {offsets = [208, 0], sizes = [8, 64], strides = [1, 1]} : vector<288x64xf32> to vector<8x64xf32>
    %65 = vector.extract_strided_slice %14 {offsets = [216, 0], sizes = [8, 64], strides = [1, 1]} : vector<288x64xf32> to vector<8x64xf32>
    %66 = vector.extract_strided_slice %14 {offsets = [256, 0], sizes = [8, 64], strides = [1, 1]} : vector<288x64xf32> to vector<8x64xf32>
    %67 = vector.extract_strided_slice %14 {offsets = [264, 0], sizes = [8, 64], strides = [1, 1]} : vector<288x64xf32> to vector<8x64xf32>
    %68 = arith.maximumf %64, %65 : vector<8x64xf32>
    %69 = arith.maximumf %66, %67 : vector<8x64xf32>
    %70 = arith.maximumf %68, %69 : vector<8x64xf32>
    %71 = vector.extract_strided_slice %14 {offsets = [224, 0], sizes = [8, 64], strides = [1, 1]} : vector<288x64xf32> to vector<8x64xf32>
    %72 = vector.extract_strided_slice %14 {offsets = [232, 0], sizes = [8, 64], strides = [1, 1]} : vector<288x64xf32> to vector<8x64xf32>
    %73 = vector.extract_strided_slice %14 {offsets = [272, 0], sizes = [8, 64], strides = [1, 1]} : vector<288x64xf32> to vector<8x64xf32>
    %74 = vector.extract_strided_slice %14 {offsets = [280, 0], sizes = [8, 64], strides = [1, 1]} : vector<288x64xf32> to vector<8x64xf32>
    %75 = arith.maximumf %71, %72 : vector<8x64xf32>
    %76 = arith.maximumf %73, %74 : vector<8x64xf32>
    %77 = arith.maximumf %75, %76 : vector<8x64xf32>
    %cst_11 = arith.constant 0.000000e+00 : f32
    %78 = vector.broadcast %cst_11 : f32 to vector<8x64xf32>
    %cst_12 = arith.constant 0.000000e+00 : f32
    %79 = vector.broadcast %cst_12 : f32 to vector<32x128xf32>
    %80 = tpu.concatenate %78, %78, %78, %21 in 0 : vector<8x64xf32>, vector<8x64xf32>, vector<8x64xf32>, vector<8x64xf32> -> vector<32x64xf32>
    %c0_13 = arith.constant 0 : index
    %c0_14 = arith.constant 0 : index
    %c0_15 = arith.constant 0 : index
    %81 = vector.load %arg6[%c0_13, %c0_14, %c0_15] : memref<9x64x128xf32, #tpu.memory_space<vmem>>, vector<1x64x128xf32>
    %82 = vector.shape_cast %81 : vector<1x64x128xf32> to vector<64x128xf32>
    %cst_16 = arith.constant dense<0.000000e+00> : vector<32x128xf32>
    %83 = tpu.matmul %80, %82, %cst_16 {dimension_numbers = #tpu.dot_dimension_numbers<[1], [0], [0], [1], [0, 0, 1, 1], [], []>} : vector<32x64xf32>, vector<64x128xf32>, vector<32x128xf32> -> vector<32x128xf32>
    %84 = arith.addf %79, %83 : vector<32x128xf32>
    %85 = tpu.concatenate %78, %78, %21, %28 in 0 : vector<8x64xf32>, vector<8x64xf32>, vector<8x64xf32>, vector<8x64xf32> -> vector<32x64xf32>
    %c1 = arith.constant 1 : index
    %c0_17 = arith.constant 0 : index
    %c0_18 = arith.constant 0 : index
    %86 = vector.load %arg6[%c1, %c0_17, %c0_18] : memref<9x64x128xf32, #tpu.memory_space<vmem>>, vector<1x64x128xf32>
    %87 = vector.shape_cast %86 : vector<1x64x128xf32> to vector<64x128xf32>
    %cst_19 = arith.constant dense<0.000000e+00> : vector<32x128xf32>
    %88 = tpu.matmul %85, %87, %cst_19 {dimension_numbers = #tpu.dot_dimension_numbers<[1], [0], [0], [1], [0, 0, 1, 1], [], []>} : vector<32x64xf32>, vector<64x128xf32>, vector<32x128xf32> -> vector<32x128xf32>
    %89 = arith.addf %84, %88 : vector<32x128xf32>
    %90 = tpu.concatenate %78, %78, %28, %35 in 0 : vector<8x64xf32>, vector<8x64xf32>, vector<8x64xf32>, vector<8x64xf32> -> vector<32x64xf32>
    %c2 = arith.constant 2 : index
    %c0_20 = arith.constant 0 : index
    %c0_21 = arith.constant 0 : index
    %91 = vector.load %arg6[%c2, %c0_20, %c0_21] : memref<9x64x128xf32, #tpu.memory_space<vmem>>, vector<1x64x128xf32>
    %92 = vector.shape_cast %91 : vector<1x64x128xf32> to vector<64x128xf32>
    %cst_22 = arith.constant dense<0.000000e+00> : vector<32x128xf32>
    %93 = tpu.matmul %90, %92, %cst_22 {dimension_numbers = #tpu.dot_dimension_numbers<[1], [0], [0], [1], [0, 0, 1, 1], [], []>} : vector<32x64xf32>, vector<64x128xf32>, vector<32x128xf32> -> vector<32x128xf32>
    %94 = arith.addf %89, %93 : vector<32x128xf32>
    %95 = tpu.concatenate %78, %21, %78, %42 in 0 : vector<8x64xf32>, vector<8x64xf32>, vector<8x64xf32>, vector<8x64xf32> -> vector<32x64xf32>
    %c3 = arith.constant 3 : index
    %c0_23 = arith.constant 0 : index
    %c0_24 = arith.constant 0 : index
    %96 = vector.load %arg6[%c3, %c0_23, %c0_24] : memref<9x64x128xf32, #tpu.memory_space<vmem>>, vector<1x64x128xf32>
    %97 = vector.shape_cast %96 : vector<1x64x128xf32> to vector<64x128xf32>
    %cst_25 = arith.constant dense<0.000000e+00> : vector<32x128xf32>
    %98 = tpu.matmul %95, %97, %cst_25 {dimension_numbers = #tpu.dot_dimension_numbers<[1], [0], [0], [1], [0, 0, 1, 1], [], []>} : vector<32x64xf32>, vector<64x128xf32>, vector<32x128xf32> -> vector<32x128xf32>
    %99 = arith.addf %94, %98 : vector<32x128xf32>
    %100 = tpu.concatenate %21, %28, %42, %49 in 0 : vector<8x64xf32>, vector<8x64xf32>, vector<8x64xf32>, vector<8x64xf32> -> vector<32x64xf32>
    %c4 = arith.constant 4 : index
    %c0_26 = arith.constant 0 : index
    %c0_27 = arith.constant 0 : index
    %101 = vector.load %arg6[%c4, %c0_26, %c0_27] : memref<9x64x128xf32, #tpu.memory_space<vmem>>, vector<1x64x128xf32>
    %102 = vector.shape_cast %101 : vector<1x64x128xf32> to vector<64x128xf32>
    %cst_28 = arith.constant dense<0.000000e+00> : vector<32x128xf32>
    %103 = tpu.matmul %100, %102, %cst_28 {dimension_numbers = #tpu.dot_dimension_numbers<[1], [0], [0], [1], [0, 0, 1, 1], [], []>} : vector<32x64xf32>, vector<64x128xf32>, vector<32x128xf32> -> vector<32x128xf32>
    %104 = arith.addf %99, %103 : vector<32x128xf32>
    %105 = tpu.concatenate %28, %35, %49, %56 in 0 : vector<8x64xf32>, vector<8x64xf32>, vector<8x64xf32>, vector<8x64xf32> -> vector<32x64xf32>
    %c5 = arith.constant 5 : index
    %c0_29 = arith.constant 0 : index
    %c0_30 = arith.constant 0 : index
    %106 = vector.load %arg6[%c5, %c0_29, %c0_30] : memref<9x64x128xf32, #tpu.memory_space<vmem>>, vector<1x64x128xf32>
    %107 = vector.shape_cast %106 : vector<1x64x128xf32> to vector<64x128xf32>
    %cst_31 = arith.constant dense<0.000000e+00> : vector<32x128xf32>
    %108 = tpu.matmul %105, %107, %cst_31 {dimension_numbers = #tpu.dot_dimension_numbers<[1], [0], [0], [1], [0, 0, 1, 1], [], []>} : vector<32x64xf32>, vector<64x128xf32>, vector<32x128xf32> -> vector<32x128xf32>
    %109 = arith.addf %104, %108 : vector<32x128xf32>
    %110 = tpu.concatenate %78, %42, %78, %63 in 0 : vector<8x64xf32>, vector<8x64xf32>, vector<8x64xf32>, vector<8x64xf32> -> vector<32x64xf32>
    %c6 = arith.constant 6 : index
    %c0_32 = arith.constant 0 : index
    %c0_33 = arith.constant 0 : index
    %111 = vector.load %arg6[%c6, %c0_32, %c0_33] : memref<9x64x128xf32, #tpu.memory_space<vmem>>, vector<1x64x128xf32>
    %112 = vector.shape_cast %111 : vector<1x64x128xf32> to vector<64x128xf32>
    %cst_34 = arith.constant dense<0.000000e+00> : vector<32x128xf32>
    %113 = tpu.matmul %110, %112, %cst_34 {dimension_numbers = #tpu.dot_dimension_numbers<[1], [0], [0], [1], [0, 0, 1, 1], [], []>} : vector<32x64xf32>, vector<64x128xf32>, vector<32x128xf32> -> vector<32x128xf32>
    %114 = arith.addf %109, %113 : vector<32x128xf32>
    %115 = tpu.concatenate %42, %49, %63, %70 in 0 : vector<8x64xf32>, vector<8x64xf32>, vector<8x64xf32>, vector<8x64xf32> -> vector<32x64xf32>
    %c7 = arith.constant 7 : index
    %c0_35 = arith.constant 0 : index
    %c0_36 = arith.constant 0 : index
    %116 = vector.load %arg6[%c7, %c0_35, %c0_36] : memref<9x64x128xf32, #tpu.memory_space<vmem>>, vector<1x64x128xf32>
    %117 = vector.shape_cast %116 : vector<1x64x128xf32> to vector<64x128xf32>
    %cst_37 = arith.constant dense<0.000000e+00> : vector<32x128xf32>
    %118 = tpu.matmul %115, %117, %cst_37 {dimension_numbers = #tpu.dot_dimension_numbers<[1], [0], [0], [1], [0, 0, 1, 1], [], []>} : vector<32x64xf32>, vector<64x128xf32>, vector<32x128xf32> -> vector<32x128xf32>
    %119 = arith.addf %114, %118 : vector<32x128xf32>
    %120 = tpu.concatenate %49, %56, %70, %77 in 0 : vector<8x64xf32>, vector<8x64xf32>, vector<8x64xf32>, vector<8x64xf32> -> vector<32x64xf32>
    %c8 = arith.constant 8 : index
    %c0_38 = arith.constant 0 : index
    %c0_39 = arith.constant 0 : index
    %121 = vector.load %arg6[%c8, %c0_38, %c0_39] : memref<9x64x128xf32, #tpu.memory_space<vmem>>, vector<1x64x128xf32>
    %122 = vector.shape_cast %121 : vector<1x64x128xf32> to vector<64x128xf32>
    %cst_40 = arith.constant dense<0.000000e+00> : vector<32x128xf32>
    %123 = tpu.matmul %120, %122, %cst_40 {dimension_numbers = #tpu.dot_dimension_numbers<[1], [0], [0], [1], [0, 0, 1, 1], [], []>} : vector<32x64xf32>, vector<64x128xf32>, vector<32x128xf32> -> vector<32x128xf32>
    %124 = arith.addf %119, %123 : vector<32x128xf32>
    %c0_41 = arith.constant 0 : index
    %c0_42 = arith.constant 0 : index
    %125 = vector.load %arg7[%c0_41, %c0_42] : memref<1x128xf32, #tpu.memory_space<vmem>>, vector<1x128xf32>
    %126 = vector.broadcast %125 : vector<1x128xf32> to vector<32x128xf32>
    %127 = arith.addf %124, %126 : vector<32x128xf32>
    %cst_43 = arith.constant 0.000000e+00 : f32
    %128 = vector.broadcast %cst_43 : f32 to vector<32x128xf32>
    %129 = arith.maximumf %127, %128 : vector<32x128xf32>
    %c0_44 = arith.constant 0 : index
    %c0_45 = arith.constant 0 : index
    %130 = vector.load %arg8[%c0_44, %c0_45] : memref<1x128xf32, #tpu.memory_space<vmem>>, vector<1x128xf32>
    %131 = vector.broadcast %130 : vector<1x128xf32> to vector<32x128xf32>
    %132 = arith.mulf %129, %131 : vector<32x128xf32>
    %c0_46 = arith.constant 0 : index
    %c0_47 = arith.constant 0 : index
    %133 = vector.load %arg9[%c0_46, %c0_47] : memref<1x128xf32, #tpu.memory_space<vmem>>, vector<1x128xf32>
    %134 = vector.broadcast %133 : vector<1x128xf32> to vector<32x128xf32>
    %135 = arith.addf %132, %134 : vector<32x128xf32>
    %136 = vector.extract_strided_slice %135 {offsets = [0, 0], sizes = [8, 128], strides = [1, 1]} : vector<32x128xf32> to vector<8x128xf32>
    %137 = vector.extract_strided_slice %135 {offsets = [8, 0], sizes = [8, 128], strides = [1, 1]} : vector<32x128xf32> to vector<8x128xf32>
    %138 = arith.maximumf %136, %137 : vector<8x128xf32>
    %139 = vector.extract_strided_slice %135 {offsets = [16, 0], sizes = [8, 128], strides = [1, 1]} : vector<32x128xf32> to vector<8x128xf32>
    %140 = vector.extract_strided_slice %135 {offsets = [24, 0], sizes = [8, 128], strides = [1, 1]} : vector<32x128xf32> to vector<8x128xf32>
    %141 = arith.maximumf %139, %140 : vector<8x128xf32>
    %142 = arith.maximumf %138, %141 : vector<8x128xf32>
    %c0_48 = arith.constant 0 : index
    %c0_49 = arith.constant 0 : index
    %143 = vector.load %arg10[%c0_48, %c0_49] : memref<128x256xf32, #tpu.memory_space<vmem>>, vector<128x256xf32>
    %cst_50 = arith.constant dense<0.000000e+00> : vector<8x256xf32>
    %144 = tpu.matmul %142, %143, %cst_50 {dimension_numbers = #tpu.dot_dimension_numbers<[1], [0], [0], [1], [0, 0, 1, 1], [], []>} : vector<8x128xf32>, vector<128x256xf32>, vector<8x256xf32> -> vector<8x256xf32>
    %c0_51 = arith.constant 0 : index
    %c0_52 = arith.constant 0 : index
    %145 = vector.load %arg11[%c0_51, %c0_52] : memref<1x256xf32, #tpu.memory_space<vmem>>, vector<1x256xf32>
    %146 = vector.broadcast %145 : vector<1x256xf32> to vector<8x256xf32>
    %147 = arith.addf %144, %146 : vector<8x256xf32>
    %cst_53 = arith.constant 0.000000e+00 : f32
    %148 = vector.broadcast %cst_53 : f32 to vector<8x256xf32>
    %149 = arith.maximumf %147, %148 : vector<8x256xf32>
    %c0_54 = arith.constant 0 : index
    %c0_55 = arith.constant 0 : index
    %150 = vector.load %arg12[%c0_54, %c0_55] : memref<1x256xf32, #tpu.memory_space<vmem>>, vector<1x256xf32>
    %151 = vector.broadcast %150 : vector<1x256xf32> to vector<8x256xf32>
    %152 = arith.mulf %149, %151 : vector<8x256xf32>
    %c0_56 = arith.constant 0 : index
    %c0_57 = arith.constant 0 : index
    %153 = vector.load %arg13[%c0_56, %c0_57] : memref<1x256xf32, #tpu.memory_space<vmem>>, vector<1x256xf32>
    %154 = vector.broadcast %153 : vector<1x256xf32> to vector<8x256xf32>
    %155 = arith.addf %152, %154 : vector<8x256xf32>
    %c0_58 = arith.constant 0 : index
    %c0_59 = arith.constant 0 : index
    %156 = vector.load %arg14[%c0_58, %c0_59] : memref<256x128xf32, #tpu.memory_space<vmem>>, vector<256x128xf32>
    %cst_60 = arith.constant dense<0.000000e+00> : vector<8x128xf32>
    %157 = tpu.matmul %155, %156, %cst_60 {dimension_numbers = #tpu.dot_dimension_numbers<[1], [0], [0], [1], [0, 0, 1, 1], [], []>} : vector<8x256xf32>, vector<256x128xf32>, vector<8x128xf32> -> vector<8x128xf32>
    %c0_61 = arith.constant 0 : index
    %c0_62 = arith.constant 0 : index
    %158 = vector.load %arg15[%c0_61, %c0_62] : memref<1x128xf32, #tpu.memory_space<vmem>>, vector<1x128xf32>
    %159 = vector.broadcast %158 : vector<1x128xf32> to vector<8x128xf32>
    %160 = arith.addf %157, %159 : vector<8x128xf32>
    %cst_63 = arith.constant dense<0xFF800000> : vector<8xf32>
    %161 = vector.multi_reduction <maximumf>, %160, %cst_63 [1] : vector<8x128xf32> to vector<8xf32>
    %162 = vector.shape_cast %161 : vector<8xf32> to vector<8x1xf32>
    %163 = vector.broadcast %162 : vector<8x1xf32> to vector<8x128xf32>
    %164 = arith.subf %160, %163 : vector<8x128xf32>
    %165 = math.exp %164 : vector<8x128xf32>
    %cst_64 = arith.constant dense<0.000000e+00> : vector<8xf32>
    %166 = vector.multi_reduction <add>, %165, %cst_64 [1] : vector<8x128xf32> to vector<8xf32>
    %167 = vector.shape_cast %166 : vector<8xf32> to vector<8x1xf32>
    %168 = tpu.reciprocal %167 {approx = true} : vector<8x1xf32> -> vector<8x1xf32>
    %169 = arith.mulf %167, %168 : vector<8x1xf32>
    %cst_65 = arith.constant 2.000000e+00 : f32
    %170 = vector.broadcast %cst_65 : f32 to vector<8x1xf32>
    %171 = arith.subf %170, %169 : vector<8x1xf32>
    %172 = arith.mulf %168, %171 : vector<8x1xf32>
    %173 = vector.broadcast %172 : vector<8x1xf32> to vector<8x128xf32>
    %174 = arith.mulf %165, %173 : vector<8x128xf32>
    %c0_66 = arith.constant 0 : index
    %c0_67 = arith.constant 0 : index
    %175 = vector.load %arg16[%c0_66, %c0_67] : memref<8x128xf32, #tpu.memory_space<vmem>>, vector<8x128xf32>
    tpu.vector_store %arg16[%c0_66, %c0_67], %174 {strides = array<i32>} : memref<8x128xf32, #tpu.memory_space<vmem>>, vector<8x128xf32>,
    return
  }
  func.func @transform_0(%arg0: i32) -> (i32, i32, i32) {
    %c0_i32 = arith.constant 0 : i32
    %c0_i32_0 = arith.constant 0 : i32
    %c0_i32_1 = arith.constant 0 : i32
    return %c0_i32, %arg0, %c0_i32_0 : i32, i32, i32
  }
  func.func @transform_1(%arg0: i32) -> (i32, i32) {
    %c0_i32 = arith.constant 0 : i32
    %c0_i32_0 = arith.constant 0 : i32
    %c0_i32_1 = arith.constant 0 : i32
    return %c0_i32, %c0_i32_0 : i32, i32
  }
  func.func @transform_2(%arg0: i32) -> (i32, i32) {
    %c0_i32 = arith.constant 0 : i32
    %c0_i32_0 = arith.constant 0 : i32
    %c0_i32_1 = arith.constant 0 : i32
    return %c0_i32, %c0_i32_0 : i32, i32
  }
  func.func @transform_3(%arg0: i32) -> (i32, i32) {
    %c0_i32 = arith.constant 0 : i32
    %c0_i32_0 = arith.constant 0 : i32
    %c0_i32_1 = arith.constant 0 : i32
    return %c0_i32, %c0_i32_0 : i32, i32
  }
  func.func @transform_4(%arg0: i32) -> (i32, i32) {
    %c0_i32 = arith.constant 0 : i32
    %c0_i32_0 = arith.constant 0 : i32
    %c0_i32_1 = arith.constant 0 : i32
    return %c0_i32, %c0_i32_0 : i32, i32
  }
  func.func @transform_5(%arg0: i32) -> (i32, i32, i32) {
    %c0_i32 = arith.constant 0 : i32
    %c0_i32_0 = arith.constant 0 : i32
    %c0_i32_1 = arith.constant 0 : i32
    %c0_i32_2 = arith.constant 0 : i32
    return %c0_i32, %c0_i32_0, %c0_i32_1 : i32, i32, i32
  }
  func.func @transform_6(%arg0: i32) -> (i32, i32) {
    %c0_i32 = arith.constant 0 : i32
    %c0_i32_0 = arith.constant 0 : i32
    %c0_i32_1 = arith.constant 0 : i32
    return %c0_i32, %c0_i32_0 : i32, i32
  }
  func.func @transform_7(%arg0: i32) -> (i32, i32) {
    %c0_i32 = arith.constant 0 : i32
    %c0_i32_0 = arith.constant 0 : i32
    %c0_i32_1 = arith.constant 0 : i32
    return %c0_i32, %c0_i32_0 : i32, i32
  }
  func.func @transform_8(%arg0: i32) -> (i32, i32) {
    %c0_i32 = arith.constant 0 : i32
    %c0_i32_0 = arith.constant 0 : i32
    %c0_i32_1 = arith.constant 0 : i32
    return %c0_i32, %c0_i32_0 : i32, i32
  }
  func.func @transform_9(%arg0: i32) -> (i32, i32) {
    %c0_i32 = arith.constant 0 : i32
    %c0_i32_0 = arith.constant 0 : i32
    %c0_i32_1 = arith.constant 0 : i32
    return %c0_i32, %c0_i32_0 : i32, i32
  }
  func.func @transform_10(%arg0: i32) -> (i32, i32) {
    %c0_i32 = arith.constant 0 : i32
    %c0_i32_0 = arith.constant 0 : i32
    %c0_i32_1 = arith.constant 0 : i32
    return %c0_i32, %c0_i32_0 : i32, i32
  }
  func.func @transform_11(%arg0: i32) -> (i32, i32) {
    %c0_i32 = arith.constant 0 : i32
    %c0_i32_0 = arith.constant 0 : i32
    %c0_i32_1 = arith.constant 0 : i32
    return %c0_i32, %c0_i32_0 : i32, i32
  }
  func.func @transform_12(%arg0: i32) -> (i32, i32) {
    %c0_i32 = arith.constant 0 : i32
    %c0_i32_0 = arith.constant 0 : i32
    %c0_i32_1 = arith.constant 0 : i32
    return %c0_i32, %c0_i32_0 : i32, i32
  }
  func.func @transform_13(%arg0: i32) -> (i32, i32) {
    %c0_i32 = arith.constant 0 : i32
    %c0_i32_0 = arith.constant 0 : i32
    %c0_i32_1 = arith.constant 0 : i32
    return %c0_i32, %c0_i32_0 : i32, i32
  }
  func.func @transform_14(%arg0: i32) -> (i32, i32) {
    %c0_i32 = arith.constant 0 : i32
    %c0_i32_0 = arith.constant 0 : i32
    %c0_i32_1 = arith.constant 0 : i32
    return %c0_i32, %c0_i32_0 : i32, i32
  }
  func.func @transform_15(%arg0: i32) -> (i32, i32) {
    %c0_i32 = arith.constant 0 : i32
    %c0_i32_0 = arith.constant 0 : i32
    return %arg0, %c0_i32 : i32, i32
  }
}

</mosaic_0001>

<bundles_post_ra>
// kernel: _lambda_.1
= control target key start
LH: loop header
LB: loop body
LE: loop exit
PB: predicated region body
PF: predicated region fallthrough
CT: control target
= control target key end

     0   :  { %vm204_vm0 = vcmask 1040384   ;;  %vm95_vm1 = vcmask 72704   ;;  %vm2639_vm2 = vmmov 1   ;;  %v2640_v60 = vmov 0.0   ;;  %s3555_s1 = inlined_call_operand.vmem [shape: f32[9,64], index: 1, kind: input, shape index: {}]   ;;  %s3556_s0 = inlined_call_operand.vmem [shape: f32[36,8,9], index: 0, kind: input, shape index: {}]   ;;  %s3557_s5 = inlined_call_operand.vmem [shape: f32[9,64,128], index: 5, kind: input, shape index: {}]   ;;  %s3558_s2 = inlined_call_operand.vmem [shape: f32[1,64], index: 2, kind: input, shape index: {}]   ;;  %s3559_s3 = inlined_call_operand.vmem [shape: f32[1,64], index: 3, kind: input, shape index: {}]   ;;  %s3560_s4 = inlined_call_operand.vmem [shape: f32[1,64], index: 4, kind: input, shape index: {}]   ;;  %s3561_s9 = inlined_call_operand.vmem [shape: f32[128,256], index: 9, kind: input, shape index: {}]   ;;  %s3562_s13 = inlined_call_operand.vmem [shape: f32[256,128], index: 13, kind: input, shape index: {}]   ;;  %s3563_s6 = inlined_call_operand.vmem [shape: f32[1,128], index: 6, kind: input, shape index: {}]   ;;  %s3564_s7 = inlined_call_operand.vmem [shape: f32[1,128], index: 7, kind: input, shape index: {}]   ;;  %s3565_s8 = inlined_call_operand.vmem [shape: f32[1,128], index: 8, kind: input, shape index: {}]   ;;  %s3566_s10 = inlined_call_operand.vmem [shape: f32[1,256], index: 10, kind: input, shape index: {}]   ;;  %s3567_s11 = inlined_call_operand.vmem [shape: f32[1,256], index: 11, kind: input, shape index: {}]   ;;  %s3568_s12 = inlined_call_operand.vmem [shape: f32[1,256], index: 12, kind: input, shape index: {}]   ;;  %s3569_s14 = inlined_call_operand.vmem [shape: f32[1,128], index: 14, kind: input, shape index: {}]   ;;  %s3570_s15 = inlined_call_operand.vmem [shape: f32[8,128], index: 15, kind: output, shape index: {}]  }
   0x1   :  { %v86_v0 = vld [vmem:[%s3555_s1] sm:$0xff]  ;;  %v87_v1 = vld [vmem:[%s3555_s1 + $0x8] sm:$0x1]  ;;  %vm2388_vm3 = vmpackc.low %vm204_vm0, %vm2639_vm2  ;;  %2227 = vmatprep.mubr.f32.mxu1 %v2640_v60  ;;  %vm619_vm4 = vcmask 523264  }
   0x2   :  { %v2387_v2 = vpack.c.bf16 %v87_v1, %v86_v0  ;;  %v50_v3 = vld [vmem:[%s3556_s0] sm:$0xff]  ;;  %v51_v4 = vld [vmem:[%s3556_s0 + $0x8] sm:$0xff]  ;;  %v52_v5 = vld [vmem:[%s3556_s0 + $0x10] sm:$0xff] }
   0x3   :  { %2135 = vmatprep.mubr.msk.f32.mxu0 %vm95_vm1, %v50_v3  ;;  %v53_v6 = vld [vmem:[%s3556_s0 + $0x18] sm:$0xff]  ;;  %v54_v7 = vld [vmem:[%s3556_s0 + $0x20] sm:$0xff]  ;;  %v55_v8 = vld [vmem:[%s3556_s0 + $0x28] sm:$0xff] }
   0x4   :  { %2389 = vmatprep.subr.msk.bf16.mxu0 %vm2388_vm3, %v2387_v2  ;;  %v56_v9 = vld [vmem:[%s3556_s0 + $0x30] sm:$0xff]  ;;  %v602_v10 = vld [vmem:[%s3557_s5] sm:$0xff]  ;;  %v603_v11 = vld [vmem:[%s3557_s5 + $0x8] sm:$0xff] }
   0x5   :  { %2392 = vmatpush3.bf16.msk.msra.mxu0 %vm2388_vm3, %v2387_v2  ;;  %v2409_v12 = vpack.c.bf16 %v603_v11, %v602_v10  ;;  %v57_v13 = vld [vmem:[%s3556_s0 + $0x38] sm:$0xff]  ;;  %v58_v14 = vld [vmem:[%s3556_s0 + $0x40] sm:$0xff]  ;;  %v59_v15 = vld [vmem:[%s3556_s0 + $0x48] sm:$0xff] }
   0x6   :  { %v60_v16 = vld [vmem:[%s3556_s0 + $0x50] sm:$0xff]  ;;  %v61_v17 = vld [vmem:[%s3556_s0 + $0x58] sm:$0xff]  ;;  %v62_v18 = vld [vmem:[%s3556_s0 + $0x60] sm:$0xff] }
   0x7   :  { %2410 = vmatprep.subr.bf16.mxu1 %v2409_v12  ;;  %v63_v19 = vld [vmem:[%s3556_s0 + $0x68] sm:$0xff]  ;;  %v64_v20 = vld [vmem:[%s3556_s0 + $0x70] sm:$0xff]  ;;  %v65_v21 = vld [vmem:[%s3556_s0 + $0x78] sm:$0xff] }
   0x8   :  { %2136 = vmatmul.mubr.msk.f32.vlgmr.msra.gmra.mrb[0].mxu0 %vm95_vm1, %v51_v4  ;;  %2412 = vmatpush3.bf16.msra.mxu1 %v2409_v12  ;;  %v66_v22 = vld [vmem:[%s3556_s0 + $0x80] sm:$0xff]  ;;  %v67_v23 = vld [vmem:[%s3556_s0 + $0x88] sm:$0xff]  ;;  %v68_v24 = vld [vmem:[%s3556_s0 + $0x90] sm:$0xff] }
   0x9   :  { %2138 = vmatprep.mubr.msk.f32.mxu0 %vm95_vm1, %v52_v5  ;;  %v69_v25 = vld [vmem:[%s3556_s0 + $0x98] sm:$0xff]  ;;  %v70_v26 = vld [vmem:[%s3556_s0 + $0xa0] sm:$0xff]  ;;  %v71_v27 = vld [vmem:[%s3556_s0 + $0xa8] sm:$0xff] }
   0xa   :  { %v72_v28 = vld [vmem:[%s3556_s0 + $0xb0] sm:$0xff]  ;;  %v73_v29 = vld [vmem:[%s3556_s0 + $0xb8] sm:$0xff]  ;;  %v74_v30 = vld [vmem:[%s3556_s0 + $0xc0] sm:$0xff] }
   0xb   :  { %v75_v31 = vld [vmem:[%s3556_s0 + $0xc8] sm:$0xff]  ;;  %v76_v32 = vld [vmem:[%s3556_s0 + $0xd0] sm:$0xff]  ;;  %v77_v33 = vld [vmem:[%s3556_s0 + $0xd8] sm:$0xff] }
   0xc   :  { %2139 = vmatmul.mubr.msk.f32.gmra.mrb[2].mxu0 %vm95_vm1, %v53_v6  ;;  %v78_v34 = vld [vmem:[%s3556_s0 + $0xe0] sm:$0xff]  ;;  %v79_v35 = vld [vmem:[%s3556_s0 + $0xe8] sm:$0xff]  ;;  %v80_v36 = vld [vmem:[%s3556_s0 + $0xf0] sm:$0xff] }
   0xd   :  { %2141 = vmatprep.mubr.msk.f32.mxu0 %vm95_vm1, %v54_v7  ;;  %v81_v37 = vld [vmem:[%s3556_s0 + $0xf8] sm:$0xff]  ;;  %v82_v38 = vld [vmem:[%s3556_s0 + $0x100] sm:$0xff]  ;;  %v83_v39 = vld [vmem:[%s3556_s0 + $0x108] sm:$0xff] }
   0xe   :  { %v84_v40 = vld [vmem:[%s3556_s0 + $0x110] sm:$0xff]  ;;  %v85_v41 = vld [vmem:[%s3556_s0 + $0x118] sm:$0xff]  ;;  %v606_v45 = vld [vmem:[%s3557_s5 + $0x20] sm:$0xff] }
   0xf   :  { %v604_v42 = vld [vmem:[%s3557_s5 + $0x10] sm:$0xff]  ;;  %v605_v43 = vld [vmem:[%s3557_s5 + $0x18] sm:$0xff]  ;;  %v607_v46 = vld [vmem:[%s3557_s5 + $0x28] sm:$0xff] }
  0x10   :  { %2142 = vmatmul.mubr.msk.f32.gmra.mrb[4].mxu0 %vm95_vm1, %v55_v8  ;;  %v2413_v44 = vpack.c.bf16 %v605_v43, %v604_v42  ;;  %v2417_v47 = vpack.c.bf16 %v607_v46, %v606_v45  ;;  %v1857_v48 = vld [vmem:[%s3557_s5 + $0x40] sm:$0xff]  ;;  %v1858_v49 = vld [vmem:[%s3557_s5 + $0x48] sm:$0xff]  ;;  %v608_v50 = vld [vmem:[%s3557_s5 + $0x30] sm:$0xff] }
  0x11   :  { %2144 = vmatprep.mubr.msk.f32.mxu0 %vm95_vm1, %v56_v9  ;;  %v2393_v51 = vpack.c.bf16 %v1858_v49, %v1857_v48  ;;  %v609_v52 = vld [vmem:[%s3557_s5 + $0x38] sm:$0xff]  ;;  %v1859_v54 = vld [vmem:[%s3557_s5 + $0x50] sm:$0xff]  ;;  %v1868_v56 = vld [vmem:[%s3557_s5 + $0x80] sm:$0xff] }
  0x12   :  { %2414 = vmatprep.subr.bf16.mxu1 %v2413_v44  ;;  %v2421_v53 = vpack.c.bf16 %v609_v52, %v608_v50  ;;  %v1860_v55 = vld [vmem:[%s3557_s5 + $0x58] sm:$0xff]  ;;  %v1869_v58 = vld [vmem:[%s3557_s5 + $0x88] sm:$0xff]  ;;  %v1861_v61 = vld [vmem:[%s3557_s5 + $0x60] sm:$0xff] }
  0x13   :  { %2416 = vmatpush3.bf16.msra.mxu1 %v2413_v44  ;;  %2394 = vmatprep.subr.bf16.mxu0 %v2393_v51  ;;  %v2397_v57 = vpack.c.bf16 %v1860_v55, %v1859_v54  ;;  %v2425_v59 = vpack.c.bf16 %v1869_v58, %v1868_v56  ;;  %v1862_v62 = vld [vmem:[%s3557_s5 + $0x68] sm:$0xff]  ;;  %v1870_v63 = vld [vmem:[%s3557_s5 + $0x90] sm:$0xff]  ;;  %v1871_v1 = vld [vmem:[%s3557_s5 + $0x98] sm:$0xff] }
  0x14   :  { %2145 = vmatmul.mubr.msk.f32.gmra.mrb[6].mxu0 %vm95_vm1, %v57_v13  ;;  %2418 = vmatprep.subr.bf16.mxu1 %v2417_v47  ;;  %v2401_v0 = vpack.c.bf16 %v1862_v62, %v1861_v61  ;;  %v2429_v2 = vpack.c.bf16 %v1871_v1, %v1870_v63  ;;  %v1863_v3 = vld [vmem:[%s3557_s5 + $0x70] sm:$0xff]  ;;  %v1864_v4 = vld [vmem:[%s3557_s5 + $0x78] sm:$0xff]  ;;  %v1872_v5 = vld [vmem:[%s3557_s5 + $0xa0] sm:$0xff] }
  0x15   :  { %2147 = vmatprep.mubr.msk.f32.mxu0 %vm95_vm1, %v58_v14  ;;  %2396 = vmatpush3.bf16.msra.mxu0 %v2393_v51  ;;  %v2405_v6 = vpack.c.bf16 %v1864_v4, %v1863_v3  ;;  %v1873_v7 = vld [vmem:[%s3557_s5 + $0xa8] sm:$0xff]  ;;  %v1874_v9 = vld [vmem:[%s3557_s5 + $0xb0] sm:$0xff]  ;;  %v1875_v10 = vld [vmem:[%s3557_s5 + $0xb8] sm:$0xff] }
  0x16   :  { %2398 = vmatprep.subr.bf16.mxu0 %v2397_v57  ;;  %v2433_v8 = vpack.c.bf16 %v1873_v7, %v1872_v5  ;;  %v2437_v11 = vpack.c.bf16 %v1875_v10, %v1874_v9  ;;  %v1878_v12 = vld [vmem:[%s3557_s5 + $0xc0] sm:$0xff]  ;;  %v1879_v13 = vld [vmem:[%s3557_s5 + $0xc8] sm:$0xff] }
  0x17   :  { %2420 = vmatpush3.bf16.msra.mxu1 %v2417_v47  ;;  %v2954_v14 = vpack.c.bf16 %v1879_v13, %v1878_v12 }
  0x18   :  { %2148 = vmatmul.mubr.msk.f32.gmra.mrb[8].mxu0 %vm95_vm1, %v59_v15  ;;  %2422 = vmatprep.subr.bf16.mxu1 %v2421_v53  ;;  %v2960_v15 = vld [vmem:[%s3558_s2] ss:$0 sm:$0xff] }
  0x19   :  { %2150 = vmatprep.mubr.msk.f32.mxu0 %vm95_vm1, %v60_v16  ;;  %2400 = vmatpush3.bf16.msra.mxu0 %v2397_v57 }
  0x1a   :  { %2402 = vmatprep.subr.bf16.mxu0 %v2401_v0 }
  0x1b   :  { %2424 = vmatpush3.bf16.msra.mxu1 %v2421_v53 }
  0x1c   :  { %2151 = vmatmul.mubr.msk.f32.gmra.mrb[10].mxu0 %vm95_vm1, %v61_v17  ;;  %2426 = vmatprep.subr.bf16.mxu1 %v2425_v59 }
  0x1d   :  { %2153 = vmatprep.mubr.msk.f32.mxu0 %vm95_vm1, %v62_v18  ;;  %2404 = vmatpush3.bf16.msra.mxu0 %v2401_v0 }
  0x1e   :  { %2228 = vmatmul.mubr.f32.vlgmr.msra.gmra.mrb[0].mxu1 %v2640_v60  ;;  %2406 = vmatprep.subr.bf16.mxu0 %v2405_v6 }
  0x1f   :  { %2428 = vmatpush3.bf16.msra.mxu1 %v2425_v59  ;;  %2230 = vmatprep.mubr.f32.mxu1 %v2640_v60 }
  0x20   :  { %2154 = vmatmul.mubr.msk.f32.gmra.mrb[12].mxu0 %vm95_vm1, %v63_v19  ;;  %2430 = vmatprep.subr.bf16.mxu1 %v2429_v2  ;;  %v2966_v19 = vld [vmem:[%s3559_s3] ss:$0 sm:$0xff] }
  0x21   :  { %2156 = vmatprep.mubr.msk.f32.mxu0 %vm95_vm1, %v64_v20  ;;  %2408 = vmatpush3.bf16.msra.mxu0 %v2405_v6 }
  0x23   :  { %2432 = vmatpush3.bf16.msra.mxu1 %v2429_v2 }
  0x24   :  { %2157 = vmatmul.mubr.msk.f32.gmra.mrb[14].mxu0 %vm95_vm1, %v65_v21  ;;  %2434 = vmatprep.subr.bf16.mxu1 %v2433_v8 }
  0x25   :  { %2159 = vmatprep.mubr.msk.f32.mxu0 %vm95_vm1, %v66_v22  ;;  %v2972_v22 = vld [vmem:[%s3560_s4] ss:$0 sm:$0xff] }
  0x27   :  { %2436 = vmatpush3.bf16.msra.mxu1 %v2433_v8 }
  0x28   :  { %2160 = vmatmul.mubr.msk.f32.gmra.mrb[16].mxu0 %vm95_vm1, %v67_v23  ;;  %2438 = vmatprep.subr.bf16.mxu1 %v2437_v11 }
  0x29   :  { %2162 = vmatprep.mubr.msk.f32.mxu0 %vm95_vm1, %v68_v24 }
  0x2b   :  { %2440 = vmatpush3.bf16.msra.mxu1 %v2437_v11 }
  0x2c   :  { %2163 = vmatmul.mubr.msk.f32.gmra.mrb[18].mxu0 %vm95_vm1, %v69_v25  ;;  %2442 = vmatprep.subr.bf16.mxu1 %v2954_v14 }
  0x2d   :  { %2165 = vmatprep.mubr.msk.f32.mxu0 %vm95_vm1, %v70_v26 }
  0x30   :  { %2166 = vmatmul.mubr.msk.f32.gmra.mrb[20].mxu0 %vm95_vm1, %v71_v27 }
  0x31   :  { %2168 = vmatprep.mubr.msk.f32.mxu0 %vm95_vm1, %v72_v28 }
  0x34   :  { %2169 = vmatmul.mubr.msk.f32.gmra.mrb[22].mxu0 %vm95_vm1, %v73_v29 }
  0x35   :  { %2171 = vmatprep.mubr.msk.f32.mxu0 %vm95_vm1, %v74_v30 }
  0x38   :  { %2172 = vmatmul.mubr.msk.f32.gmra.mrb[24].mxu0 %vm95_vm1, %v75_v31 }
  0x39   :  { %2174 = vmatprep.mubr.msk.f32.mxu0 %vm95_vm1, %v76_v32 }
  0x3c   :  { %2175 = vmatmul.mubr.msk.f32.gmra.mrb[26].mxu0 %vm95_vm1, %v77_v33 }
  0x3d   :  { %2177 = vmatprep.mubr.msk.f32.mxu0 %vm95_vm1, %v78_v34 }
  0x40   :  { %2178 = vmatmul.mubr.msk.f32.gmra.mrb[28].mxu0 %vm95_vm1, %v79_v35 }
  0x41   :  { %2180 = vmatprep.mubr.msk.f32.mxu0 %vm95_vm1, %v80_v36 }
  0x44   :  { %2181 = vmatmul.mubr.msk.f32.gmra.mrb[30].mxu0 %vm95_vm1, %v81_v37 }
  0x45   :  { %2183 = vmatprep.mubr.msk.f32.mxu0 %vm95_vm1, %v82_v38 }
  0x48   :  { %2184 = vmatmul.mubr.msk.f32.gmra.mrb[32].mxu0 %vm95_vm1, %v83_v39 }
  0x49   :  { %2186 = vmatprep.mubr.msk.f32.mxu0 %vm95_vm1, %v84_v40 }
  0x4c   :  { %2187 = vmatmul.mubr.msk.f32.gmra.mrb[34].mxu0 %vm95_vm1, %v85_v41 }
  0x4d   :  { %2205 = vmatprep.mubr.f32.mxu0 %v2640_v60 }
  0x50   :  { %2206 = vmatmul.mubr.f32.vlgmr.msra.gmra.mrb[36].mxu0 %v2640_v60 }
  0xdb   :  { %v2137_v16 = vpop.f32.mrb[0].mxu0 }
  0xdc   :  { %v280_v17 = vadd.f32 %v2137_v16, %v2960_v15  ;;  %v274_v18 = vpop.f32.mrb[1].mxu0 }
  0xdd   :  { %v275_v20 = vadd.f32 %v2960_v15, %v274_v18 }
  0xde   :  { %v454_v21 = vmax.f32 %v280_v17, 0.0 }
  0xdf   :  { %v453_v23 = vmax.f32 %v275_v20, 0.0  ;;  %v2140_v24 = vpop.f32.mrb[2].mxu0 }
  0xe0   :  { %v497_v25 = vmul.f32 %v2966_v19, %v454_v21  ;;  %v290_v26 = vadd.f32 %v2140_v24, %v2960_v15  ;;  %v284_v27 = vpop.f32.mrb[3].mxu0  ;;  %v1880_v24 = vld [vmem:[%s3557_s5 + $0xd0] sm:$0xff] }
  0xe1   :  { %v496_v28 = vmul.f32 %v2966_v19, %v453_v23  ;;  %v285_v29 = vadd.f32 %v2960_v15, %v284_v27 }
  0xe2   :  { %v540_v30 = vadd.f32 %v2972_v22, %v497_v25  ;;  %v456_v31 = vmax.f32 %v290_v26, 0.0  ;;  %v1881_v25 = vld [vmem:[%s3557_s5 + $0xd8] sm:$0xff] }
  0xe3   :  { %v539_v32 = vadd.f32 %v2972_v22, %v496_v28  ;;  %v455_v33 = vmax.f32 %v285_v29, 0.0  ;;  %v2143_v34 = vpop.f32.mrb[4].mxu0 }
  0xe4   :  { %v499_v35 = vmul.f32 %v2966_v19, %v456_v31  ;;  %v300_v36 = vadd.f32 %v2143_v34, %v2960_v15  ;;  %v294_v37 = vpop.f32.mrb[5].mxu0 }
  0xe5   :  { %v575_v38 = vmax.f32 %v539_v32, %v540_v30  ;;  %v498_v39 = vmul.f32 %v2966_v19, %v455_v33  ;;  %v295_v40 = vadd.f32 %v2960_v15, %v294_v37 }
  0xe6   :  { %v542_v41 = vadd.f32 %v2972_v22, %v499_v35  ;;  %v458_v42 = vmax.f32 %v300_v36, 0.0  ;;  %v2445_v35 = vpack.c.bf16 %v1881_v25, %v1880_v24  ;;  %v1891_v24 = vld [vmem:[%s3557_s5 + $0x118] sm:$0xff] }
  0xe7   :  { %v541_v43 = vadd.f32 %v2972_v22, %v498_v39  ;;  %v457_v44 = vmax.f32 %v295_v40, 0.0  ;;  %v2146_v45 = vpop.f32.mrb[6].mxu0  ;;  %v1882_v39 = vld [vmem:[%s3557_s5 + $0xe0] sm:$0xff]  ;;  %v1883_v40 = vld [vmem:[%s3557_s5 + $0xe8] sm:$0xff] }
  0xe8   :  { %v501_v46 = vmul.f32 %v2966_v19, %v458_v42  ;;  %v310_v47 = vadd.f32 %v2146_v45, %v2960_v15  ;;  %v304_v48 = vpop.f32.mrb[7].mxu0 }
  0xe9   :  { %v578_v49 = vmax.f32 %v541_v43, %v542_v41  ;;  %v500_v50 = vmul.f32 %v2966_v19, %v457_v44  ;;  %v305_v51 = vadd.f32 %v2960_v15, %v304_v48 }
  0xea   :  { %v2991_v52 = vadd.f32 %v2972_v22, %v501_v46  ;;  %v460_v53 = vmax.f32 %v310_v47, 0.0 }
  0xeb   :  { %v2994_v54 = vadd.f32 %v2972_v22, %v500_v50  ;;  %v459_v55 = vmax.f32 %v305_v51, 0.0  ;;  %v2149_v56 = vpop.f32.mrb[8].mxu0  ;;  %v2449_v50 = vpack.c.bf16 %v1883_v40, %v1882_v39  ;;  %v1893_v39 = vld [vmem:[%s3557_s5 + $0x128] sm:$0xff] }
  0xec   :  { %v503_v57 = vmul.f32 %v2966_v19, %v460_v53  ;;  %v320_v58 = vadd.f32 %v2149_v56, %v2960_v15  ;;  %v314_v59 = vpop.f32.mrb[9].mxu0  ;;  %v1884_v53 = vld [vmem:[%s3557_s5 + $0xf0] sm:$0xff] }
  0xed   :  { %v581_v61 = vmax.f32 %v2994_v54, %v2991_v52  ;;  %v502_v62 = vmul.f32 %v2966_v19, %v459_v55  ;;  %v315_v63 = vadd.f32 %v2960_v15, %v314_v59  ;;  %v1885_v54 = vld [vmem:[%s3557_s5 + $0xf8] sm:$0xff] }
  0xee   :  { %v546_v0 = vadd.f32 %v2972_v22, %v503_v57  ;;  %v462_v1 = vmax.f32 %v320_v58, 0.0 }
  0xef   :  { %v545_v2 = vadd.f32 %v2972_v22, %v502_v62  ;;  %v461_v3 = vmax.f32 %v315_v63, 0.0  ;;  %v2152_v4 = vpop.f32.mrb[10].mxu0 }
  0xf0   :  { %v505_v5 = vmul.f32 %v2966_v19, %v462_v1  ;;  %v330_v6 = vadd.f32 %v2152_v4, %v2960_v15  ;;  %v324_v7 = vpop.f32.mrb[11].mxu0  ;;  %v1888_v4 = vld [vmem:[%s3557_s5 + $0x100] sm:$0xff] }
  0xf1   :  { %v576_v8 = vmax.f32 %v545_v2, %v546_v0  ;;  %v504_v9 = vmul.f32 %v2966_v19, %v461_v3  ;;  %v325_v10 = vadd.f32 %v2960_v15, %v324_v7  ;;  %v2453_v0 = vpack.c.bf16 %v1885_v54, %v1884_v53 }
  0xf2   :  { %v548_v11 = vadd.f32 %v2972_v22, %v505_v5  ;;  %v464_v12 = vmax.f32 %v330_v6, 0.0  ;;  %v1889_v5 = vld [vmem:[%s3557_s5 + $0x108] sm:$0xff] }
  0xf3   :  { %v547_v13 = vadd.f32 %v2972_v22, %v504_v9  ;;  %v463_v16 = vmax.f32 %v325_v10, 0.0  ;;  %v3010_v17 = vmax.f32 %v575_v38, %v576_v8  ;;  %v2155_v18 = vpop.f32.mrb[12].mxu0 }
  0xf4   :  { %v507_v20 = vmul.f32 %v2966_v19, %v464_v12  ;;  %v340_v21 = vadd.f32 %v2155_v18, %v2960_v15  ;;  %v334_v23 = vpop.f32.mrb[13].mxu0 }
  0xf5   :  { %v579_v26 = vmax.f32 %v547_v13, %v548_v11  ;;  %v506_v27 = vmul.f32 %v2966_v19, %v463_v16  ;;  %2208 = vmatprep.mubr.msk.f32.mxu0 %vm619_vm4, %v3010_v17  ;;  %2231 = vmatmul.mubr.msk.f32.gmra.mrb[2].mxu1 %vm619_vm4, %v3010_v17  ;;  %v335_v28 = vadd.f32 %v2960_v15, %v334_v23  ;;  %v1890_v23 = vld [vmem:[%s3557_s5 + $0x110] sm:$0xff] }
  0xf6   :  { %v550_v29 = vadd.f32 %v2972_v22, %v507_v20  ;;  %2249 = vmatprep.mubr.f32.mxu1 %v2640_v60  ;;  %v466_v30 = vmax.f32 %v340_v21, 0.0  ;;  %v2457_v16 = vpack.c.bf16 %v1889_v5, %v1888_v4 }
  0xf7   :  { %v549_v31 = vadd.f32 %v2972_v22, %v506_v27  ;;  %v3029_v32 = vmax.f32 %v578_v49, %v579_v26  ;;  %v465_v33 = vmax.f32 %v335_v28, 0.0  ;;  %v2158_v34 = vpop.f32.mrb[14].mxu0 }
  0xf8   :  { %v509_v36 = vmul.f32 %v2966_v19, %v466_v30  ;;  %v350_v37 = vadd.f32 %v2158_v34, %v2960_v15  ;;  %v344_v38 = vpop.f32.mrb[15].mxu0  ;;  %v2461_v34 = vpack.c.bf16 %v1891_v24, %v1890_v23  ;;  %v1902_v23 = vld [vmem:[%s3557_s5 + $0x150] sm:$0xff]  ;;  %v1903_v24 = vld [vmem:[%s3557_s5 + $0x158] sm:$0xff] }
  0xf9   :  { %v582_v41 = vmax.f32 %v549_v31, %v550_v29  ;;  %2209 = vmatmul.mubr.msk.f32.gmra.mrb[38].mxu0 %vm619_vm4, %v3029_v32  ;;  %2250 = vmatmul.mubr.f32.vlgmr.msra.gmra.mrb[0].mxu1 %v2640_v60  ;;  %v508_v42 = vmul.f32 %v2966_v19, %v465_v33  ;;  %v345_v43 = vadd.f32 %v2960_v15, %v344_v38  ;;  %v1892_v38 = vld [vmem:[%s3557_s5 + $0x120] sm:$0xff] }
  0xfa   :  { %v3045_v44 = vadd.f32 %v2972_v22, %v509_v36  ;;  %2444 = vmatpush3.bf16.msra.mxu1 %v2954_v14  ;;  %2252 = vmatprep.mubr.msk.f32.mxu1 %vm619_vm4, %v3029_v32  ;;  %v468_v45 = vmax.f32 %v350_v37, 0.0 }
  0xfb   :  { %v3051_v46 = vadd.f32 %v2972_v22, %v508_v42  ;;  %v467_v47 = vmax.f32 %v345_v43, 0.0  ;;  %2446 = vmatprep.subr.bf16.mxu1 %v2445_v35  ;;  %v2161_v48 = vpop.f32.mrb[16].mxu0  ;;  %v3053_v49 = vmax.f32 %v581_v61, %v582_v41  ;;  %1654 = vmatprep.mubr.f32.mxu0 %v2640_v60 }
  0xfc   :  { %v511_v51 = vmul.f32 %v2966_v19, %v468_v45  ;;  %v360_v52 = vadd.f32 %v2161_v48, %v2960_v15  ;;  %v354_v14 = vpop.f32.mrb[17].mxu0  ;;  %v2465_v48 = vpack.c.bf16 %v1893_v39, %v1892_v38 }
  0xfd   :  { %v584_v55 = vmax.f32 %v3051_v46, %v3045_v44  ;;  %v510_v56 = vmul.f32 %v2966_v19, %v467_v47  ;;  %2253 = vmatmul.mubr.msk.f32.gmra.mrb[2].mxu1 %vm619_vm4, %v3053_v49  ;;  %v355_v57 = vadd.f32 %v2960_v15, %v354_v14  ;;  %v1895_v14 = vld [vmem:[%s3557_s5 + $0x138] sm:$0xff] }
  0xfe   :  { %v3071_v58 = vadd.f32 %v2972_v22, %v511_v51  ;;  %v470_v59 = vmax.f32 %v360_v52, 0.0  ;;  %2448 = vmatpush3.bf16.msra.mxu1 %v2445_v35  ;;  %2271 = vmatprep.mubr.f32.mxu1 %v2640_v60  ;;  %v1894_v52 = vld [vmem:[%s3557_s5 + $0x130] sm:$0xff] }
  0xff   :  { %v3075_v61 = vadd.f32 %v2972_v22, %v510_v56  ;;  %v469_v62 = vmax.f32 %v355_v57, 0.0  ;;  %v2164_v63 = vpop.f32.mrb[18].mxu0  ;;  %2450 = vmatprep.subr.bf16.mxu1 %v2449_v50 }
 0x100   :  { %v513_v1 = vmul.f32 %v2966_v19, %v470_v59  ;;  %v370_v2 = vadd.f32 %v2164_v63, %v2960_v15  ;;  %v364_v3 = vpop.f32.mrb[19].mxu0 }
 0x101   :  { %v587_v6 = vmax.f32 %v3075_v61, %v3071_v58  ;;  %v512_v7 = vmul.f32 %v2966_v19, %v469_v62  ;;  %v365_v8 = vadd.f32 %v2960_v15, %v364_v3  ;;  %v2469_v62 = vpack.c.bf16 %v1895_v14, %v1894_v52  ;;  %v1901_v3 = vld [vmem:[%s3557_s5 + $0x148] sm:$0xff]  ;;  %v1906_v52 = vld [vmem:[%s3557_s5 + $0x170] sm:$0xff]  ;;  %v1907_v14 = vld [vmem:[%s3557_s5 + $0x178] sm:$0xff] }
 0x102   :  { %v3090_v9 = vadd.f32 %v2972_v22, %v513_v1  ;;  %v472_v10 = vmax.f32 %v370_v2, 0.0  ;;  %2452 = vmatpush3.bf16.msra.mxu1 %v2449_v50  ;;  %v1900_v2 = vld [vmem:[%s3557_s5 + $0x140] sm:$0xff] }
 0x103   :  { %v3093_v11 = vadd.f32 %v2972_v22, %v512_v7  ;;  %v471_v12 = vmax.f32 %v365_v8, 0.0  ;;  %v2167_v13 = vpop.f32.mrb[20].mxu0  ;;  %2454 = vmatprep.subr.bf16.mxu1 %v2453_v0 }
 0x104   :  { %v515_v18 = vmul.f32 %v2966_v19, %v472_v10  ;;  %v380_v20 = vadd.f32 %v2167_v13, %v2960_v15  ;;  %v374_v21 = vpop.f32.mrb[21].mxu0  ;;  %v2473_v13 = vpack.c.bf16 %v1901_v3, %v1900_v2  ;;  %v1912_v3 = vld [vmem:[%s3557_s5 + $0x180] sm:$0xff] }
 0x105   :  { %v590_v25 = vmax.f32 %v3093_v11, %v3090_v9  ;;  %v514_v26 = vmul.f32 %v2966_v19, %v471_v12  ;;  %v375_v27 = vadd.f32 %v2960_v15, %v374_v21 }
 0x106   :  { %v558_v28 = vadd.f32 %v2972_v22, %v515_v18  ;;  %v474_v29 = vmax.f32 %v380_v20, 0.0  ;;  %2456 = vmatpush3.bf16.msra.mxu1 %v2453_v0 }
 0x107   :  { %v557_v30 = vadd.f32 %v2972_v22, %v514_v26  ;;  %v473_v31 = vmax.f32 %v375_v27, 0.0  ;;  %v2170_v33 = vpop.f32.mrb[22].mxu0  ;;  %2458 = vmatprep.subr.bf16.mxu1 %v2457_v16 }
 0x108   :  { %v517_v35 = vmul.f32 %v2966_v19, %v474_v29  ;;  %v390_v36 = vadd.f32 %v2170_v33, %v2960_v15  ;;  %v384_v37 = vpop.f32.mrb[23].mxu0 }
 0x109   :  { %v585_v40 = vmax.f32 %v557_v30, %v558_v28  ;;  %v516_v41 = vmul.f32 %v2966_v19, %v473_v31  ;;  %v385_v42 = vadd.f32 %v2960_v15, %v384_v37  ;;  %2272 = vmatmul.mubr.msk.f32.vlgmr.msra.gmra.mrb[0].mxu1 %vm619_vm4, %v3010_v17  ;;  %v2477_v31 = vpack.c.bf16 %v1903_v24, %v1902_v23  ;;  %v1905_v37 = vld [vmem:[%s3557_s5 + $0x168] sm:$0xff]  ;;  %v1914_v23 = vld [vmem:[%s3557_s5 + $0x190] sm:$0xff]  ;;  %v1915_v24 = vld [vmem:[%s3557_s5 + $0x198] sm:$0xff] }
 0x10a   :  { %v560_v43 = vadd.f32 %v2972_v22, %v517_v35  ;;  %v476_v44 = vmax.f32 %v390_v36, 0.0  ;;  %2460 = vmatpush3.bf16.msra.mxu1 %v2457_v16  ;;  %2274 = vmatprep.mubr.f32.mxu1 %v2640_v60  ;;  %v1904_v36 = vld [vmem:[%s3557_s5 + $0x160] sm:$0xff] }
 0x10b   :  { %v559_v45 = vadd.f32 %v2972_v22, %v516_v41  ;;  %v475_v46 = vmax.f32 %v385_v42, 0.0  ;;  %2462 = vmatprep.subr.bf16.mxu1 %v2461_v34  ;;  %v3124_v47 = vmax.f32 %v584_v55, %v585_v40  ;;  %v2173_v50 = vpop.f32.mrb[24].mxu0 }
 0x10c   :  { %v519_v51 = vmul.f32 %v2966_v19, %v476_v44  ;;  %v400_v53 = vadd.f32 %v2173_v50, %v2960_v15  ;;  %v394_v54 = vpop.f32.mrb[25].mxu0 }
 0x10d   :  { %v588_v56 = vmax.f32 %v559_v45, %v560_v43  ;;  %v518_v57 = vmul.f32 %v2966_v19, %v475_v46  ;;  %2275 = vmatmul.mubr.msk.f32.gmra.mrb[2].mxu1 %vm619_vm4, %v3124_v47  ;;  %v395_v55 = vadd.f32 %v2960_v15, %v394_v54  ;;  %v2481_v46 = vpack.c.bf16 %v1905_v37, %v1904_v36  ;;  %v1923_v36 = vld [vmem:[%s3557_s5 + $0x1c8] sm:$0xff] }
 0x10e   :  { %v562_v58 = vadd.f32 %v2972_v22, %v519_v51  ;;  %2464 = vmatpush3.bf16.msra.mxu1 %v2461_v34  ;;  %2293 = vmatprep.mubr.msk.f32.mxu1 %vm619_vm4, %v3010_v17  ;;  %v478_v59 = vmax.f32 %v400_v53, 0.0 }
 0x10f   :  { %v561_v61 = vadd.f32 %v2972_v22, %v518_v57  ;;  %2466 = vmatprep.subr.bf16.mxu1 %v2465_v48  ;;  %v3142_v63 = vmax.f32 %v587_v6, %v588_v56  ;;  %v477_v0 = vmax.f32 %v395_v55, 0.0  ;;  %v2176_v1 = vpop.f32.mrb[26].mxu0 }
 0x110   :  { %v521_v4 = vmul.f32 %v2966_v19, %v478_v59  ;;  %v410_v17 = vadd.f32 %v2176_v1, %v2960_v15  ;;  %v404_v5 = vpop.f32.mrb[27].mxu0 }
 0x111   :  { %v591_v7 = vmax.f32 %v561_v61, %v562_v58  ;;  %v520_v8 = vmul.f32 %v2966_v19, %v477_v0  ;;  %v405_v6 = vadd.f32 %v2960_v15, %v404_v5 }
 0x112   :  { %2468 = vmatpush3.bf16.msra.mxu1 %v2465_v48  ;;  %v3155_v10 = vadd.f32 %v2972_v22, %v521_v4  ;;  %v480_v12 = vmax.f32 %v410_v17, 0.0  ;;  %v1913_v4 = vld [vmem:[%s3557_s5 + $0x188] sm:$0xff] }
 0x113   :  { %2470 = vmatprep.subr.bf16.mxu1 %v2469_v62  ;;  %v3158_v16 = vadd.f32 %v2972_v22, %v520_v8  ;;  %v479_v18 = vmax.f32 %v405_v6, 0.0  ;;  %v2179_v20 = vpop.f32.mrb[28].mxu0  ;;  %v3163_v21 = vmax.f32 %v590_v25, %v591_v7 }
 0x114   :  { %v523_v26 = vmul.f32 %v2966_v19, %v480_v12  ;;  %v420_v27 = vadd.f32 %v2179_v20, %v2960_v15  ;;  %v414_v28 = vpop.f32.mrb[29].mxu0 }
 0x115   :  { %v593_v29 = vmax.f32 %v3158_v16, %v3155_v10  ;;  %v522_v9 = vmul.f32 %v2966_v19, %v479_v18  ;;  %v415_v11 = vadd.f32 %v2960_v15, %v414_v28 }
 0x116   :  { %2472 = vmatpush3.bf16.msra.mxu1 %v2469_v62  ;;  %v3178_v25 = vadd.f32 %v2972_v22, %v523_v26  ;;  %v482_v30 = vmax.f32 %v420_v27, 0.0  ;;  %v2485_v62 = vpack.c.bf16 %v1907_v14, %v1906_v52 }
 0x117   :  { %2474 = vmatprep.subr.bf16.mxu1 %v2473_v13  ;;  %v3181_v33 = vadd.f32 %v2972_v22, %v522_v9  ;;  %v481_v34 = vmax.f32 %v415_v11, 0.0  ;;  %v2182_v35 = vpop.f32.mrb[30].mxu0  ;;  %v2493_v9 = vpack.c.bf16 %v1915_v24, %v1914_v23  ;;  %v1560_v24 = vld [vmem:[%s3561_s9 + $0x70] sm:$0xff] }
 0x118   :  { %v525_v38 = vmul.f32 %v2966_v19, %v482_v30  ;;  %v430_v39 = vadd.f32 %v2182_v35, %v2960_v15  ;;  %v424_v40 = vpop.f32.mrb[31].mxu0  ;;  %v1917_v30 = vld [vmem:[%s3557_s5 + $0x1a8] sm:$0xff]  ;;  %v1922_v35 = vld [vmem:[%s3557_s5 + $0x1c0] sm:$0xff] }
 0x119   :  { %2294 = vmatmul.mubr.msk.f32.vlgmr.msra.gmra.mrb[0].mxu1 %vm619_vm4, %v3029_v32  ;;  %v596_v41 = vmax.f32 %v3181_v33, %v3178_v25  ;;  %v524_v42 = vmul.f32 %v2966_v19, %v481_v34  ;;  %v425_v43 = vadd.f32 %v2960_v15, %v424_v40  ;;  %v1916_v25 = vld [vmem:[%s3557_s5 + $0x1a0] sm:$0xff]  ;;  %v1918_v33 = vld [vmem:[%s3557_s5 + $0x1b0] sm:$0xff]  ;;  %v1919_v34 = vld [vmem:[%s3557_s5 + $0x1b8] sm:$0xff]  ;;  %v2505_v37 = vpack.c.bf16 %v1923_v36, %v1922_v35 }
 0x11a   :  { %2296 = vmatprep.mubr.msk.f32.mxu1 %vm619_vm4, %v3124_v47  ;;  %2476 = vmatpush3.bf16.msra.mxu1 %v2473_v13  ;;  %v568_v44 = vadd.f32 %v2972_v22, %v525_v38  ;;  %v484_v45 = vmax.f32 %v430_v39, 0.0  ;;  %v2489_v13 = vpack.c.bf16 %v1913_v4, %v1912_v3  ;;  %v1924_v38 = vld [vmem:[%s3557_s5 + $0x1d0] sm:$0xff]  ;;  %v1925_v39 = vld [vmem:[%s3557_s5 + $0x1d8] sm:$0xff]  ;;  %v1570_v36 = vld [vmem:[%s3561_s9 + $0xc0] sm:$0xff] }
 0x11b   :  { %2478 = vmatprep.subr.bf16.mxu1 %v2477_v31  ;;  %v567_v48 = vadd.f32 %v2972_v22, %v524_v42  ;;  %v483_v50 = vmax.f32 %v425_v43, 0.0  ;;  %v2185_v51 = vpop.f32.mrb[32].mxu0  ;;  %v2509_v40 = vpack.c.bf16 %v1925_v39, %v1924_v38  ;;  %v1927_v42 = vld [vmem:[%s3557_s5 + $0x1e8] sm:$0xff]  ;;  %v1553_v3 = vld [vmem:[%s3561_s9 + $0x38] sm:$0xff] }
 0x11c   :  { %v527_v53 = vmul.f32 %v2966_v19, %v484_v45  ;;  %v440_v54 = vadd.f32 %v2185_v51, %v2960_v15  ;;  %v434_v56 = vpop.f32.mrb[33].mxu0  ;;  %v1929_v45 = vld [vmem:[%s3557_s5 + $0x1f8] sm:$0xff]  ;;  %v1936_v51 = vld [vmem:[%s3557_s5 + $0x210] sm:$0xff]  ;;  %v1575_v39 = vld [vmem:[%s3561_s9 + $0xe8] sm:$0xff] }
 0x11d   :  { %2297 = vmatmul.mubr.msk.f32.gmra.mrb[2].mxu1 %vm619_vm4, %v3142_v63  ;;  %v599_v57 = vmax.f32 %v567_v48, %v568_v44  ;;  %v526_v55 = vmul.f32 %v2966_v19, %v483_v50  ;;  %v435_v58 = vadd.f32 %v2960_v15, %v434_v56  ;;  %v1928_v44 = vld [vmem:[%s3557_s5 + $0x1f0] sm:$0xff]  ;;  %v1935_v48 = vld [vmem:[%s3557_s5 + $0x208] sm:$0xff] }
 0x11e   :  { %2480 = vmatpush3.bf16.msra.mxu1 %v2477_v31  ;;  %2315 = vmatprep.mubr.msk.f32.mxu1 %vm619_vm4, %v3029_v32  ;;  %v570_v59 = vadd.f32 %v2972_v22, %v527_v53  ;;  %v486_v61 = vmax.f32 %v440_v54, 0.0  ;;  %v1938_v53 = vld [vmem:[%s3557_s5 + $0x220] sm:$0xff]  ;;  %v1939_v54 = vld [vmem:[%s3557_s5 + $0x228] sm:$0xff] }
 0x11f   :  { %2482 = vmatprep.subr.bf16.mxu1 %v2481_v46  ;;  %v569_v0 = vadd.f32 %v2972_v22, %v526_v55  ;;  %v485_v1 = vmax.f32 %v435_v58, 0.0  ;;  %v2188_v2 = vpop.f32.mrb[34].mxu0  ;;  %v1940_v55 = vld [vmem:[%s3557_s5 + $0x230] sm:$0xff]  ;;  %v1941_v58 = vld [vmem:[%s3557_s5 + $0x238] sm:$0xff] }
 0x120   :  { %v529_v17 = vmul.f32 %v2966_v19, %v486_v61  ;;  %v450_v32 = vadd.f32 %v2188_v2, %v2960_v15  ;;  %v444_v5 = vpop.f32.mrb[35].mxu0  ;;  %v1549_v61 = vld [vmem:[%s3561_s9 + $0x18] sm:$0xff]  ;;  %v1548_v2 = vld [vmem:[%s3561_s9 + $0x10] sm:$0xff] }
 0x121   :  { %v594_v7 = vmax.f32 %v569_v0, %v570_v59  ;;  %v528_v8 = vmul.f32 %v2966_v19, %v485_v1  ;;  %v445_v6 = vadd.f32 %v2960_v15, %v444_v5  ;;  %v1547_v59 = vld [vmem:[%s3561_s9 + $0x8] sm:$0xff]  ;;  %v2533_v0 = vpack.c.bf16 %v1941_v58, %v1940_v55  ;;  %v1552_v5 = vld [vmem:[%s3561_s9 + $0x30] sm:$0xff]  ;;  %v1947_v55 = vld [vmem:[%s3564_s7] ss:$0 sm:$0xff] }
 0x122   :  { %2484 = vmatpush3.bf16.msra.mxu1 %v2481_v46  ;;  %v572_v10 = vadd.f32 %v2972_v22, %v529_v17  ;;  %v488_v12 = vmax.f32 %v450_v32, 0.0  ;;  %v2517_v46 = vpack.c.bf16 %v1929_v45, %v1928_v44  ;;  %v2537_v1 = vpack.c.bf16 %v1549_v61, %v1547_v59  ;;  %v1550_v32 = vld [vmem:[%s3561_s9 + $0x20] sm:$0xff] }
 0x123   :  { %2486 = vmatprep.subr.bf16.mxu1 %v2485_v62  ;;  %v571_v16 = vadd.f32 %v2972_v22, %v528_v8  ;;  %v487_v18 = vmax.f32 %v445_v6, 0.0  ;;  %v3229_v20 = vmax.f32 %v593_v29, %v594_v7  ;;  %v3307_v14 = vpop.f32.mrb[36].mxu0  ;;  %v1555_v7 = vld [vmem:[%s3561_s9 + $0x48] sm:$0xff]  ;;  %v1557_v8 = vld [vmem:[%s3561_s9 + $0x58] sm:$0xff]  ;;  %v2543_v6 = vpack.c.bf16 %v1552_v5, %v1550_v32  ;;  %v1707_v45 = vld [vmem:[%s3562_s13 + $0x80] sm:$0xff] }
 0x124   :  { %v531_v15 = vmul.f32 %v2966_v19, %v488_v12  ;;  %v3315_v56 = vpop.f32.mrb[37].mxu0  ;;  %2538 = vmatprep.subr.bf16.mxu0 %v2537_v1  ;;  %v1554_v12 = vld [vmem:[%s3561_s9 + $0x40] sm:$0xff] }
 0x125   :  { %v597_v26 = vmax.f32 %v571_v16, %v572_v10  ;;  %v530_v27 = vmul.f32 %v2966_v19, %v487_v18  ;;  %v2545_v10 = vpack.c.bf16 %v1557_v8, %v1555_v7  ;;  %v1559_v18 = vld [vmem:[%s3561_s9 + $0x68] sm:$0xff]  ;;  %v1948_v1 = vld [vmem:[%s3565_s8] ss:$0 sm:$0xff] }
 0x126   :  { %2488 = vmatpush3.bf16.msra.mxu1 %v2485_v62  ;;  %v574_v28 = vadd.f32 %v2972_v22, %v531_v15  ;;  %v1546_v62 = vld [vmem:[%s3561_s9] sm:$0xff] }
 0x127   :  { %2490 = vmatprep.subr.bf16.mxu1 %v2489_v13  ;;  %v573_v29 = vadd.f32 %v2972_v22, %v530_v27  ;;  %v3241_v11 = vmax.f32 %v596_v41, %v597_v26  ;;  %v2497_v22 = vpack.c.bf16 %v1917_v30, %v1916_v25  ;;  %v1926_v41 = vld [vmem:[%s3557_s5 + $0x1e0] sm:$0xff]  ;;  %v2539_v4 = vpack.c.bf16 %v1548_v2, %v1546_v62  ;;  %v1563_v26 = vld [vmem:[%s3561_s9 + $0x88] sm:$0xff]  ;;  %v1565_v27 = vld [vmem:[%s3561_s9 + $0x98] sm:$0xff] }
 0x128   :  { %v2513_v43 = vpack.c.bf16 %v1927_v42, %v1926_v41  ;;  %v1567_v25 = vld [vmem:[%s3561_s9 + $0xa8] sm:$0xff]  ;;  %v1569_v30 = vld [vmem:[%s3561_s9 + $0xb8] sm:$0xff]  ;;  %v1574_v42 = vld [vmem:[%s3561_s9 + $0xe0] sm:$0xff] }
 0x129   :  { %2316 = vmatmul.mubr.msk.f32.vlgmr.msra.gmra.mrb[0].mxu1 %vm619_vm4, %v3053_v49  ;;  %v600_v19 = vmax.f32 %v573_v29, %v574_v28  ;;  %v2501_v49 = vpack.c.bf16 %v1919_v34, %v1918_v33  ;;  %2540 = vmatpush1.bf16.msra.mxu0 %v2539_v4  ;;  %v2553_v28 = vpack.c.bf16 %v1565_v27, %v1563_v26  ;;  %v1564_v29 = vld [vmem:[%s3561_s9 + $0x90] sm:$0xff]  ;;  %v1571_v34 = vld [vmem:[%s3561_s9 + $0xc8] sm:$0xff] }
 0x12a   :  { %2318 = vmatprep.mubr.msk.f32.mxu1 %vm619_vm4, %v3142_v63  ;;  %2492 = vmatpush3.bf16.msra.mxu1 %v2489_v13  ;;  %v1556_v13 = vld [vmem:[%s3561_s9 + $0x50] sm:$0xff] }
 0x12b   :  { %2494 = vmatprep.subr.bf16.mxu1 %v2493_v9  ;;  %v3253_v31 = vmax.f32 %v599_v57, %v600_v19  ;;  %v2529_v57 = vpack.c.bf16 %v1939_v54, %v1938_v53  ;;  %v2547_v16 = vpack.c.bf16 %v1556_v13, %v1554_v12  ;;  %v2557_v19 = vpack.c.bf16 %v1569_v30, %v1567_v25  ;;  %v1693_v27 = vld [vmem:[%s3562_s13 + $0x10] sm:$0xff]  ;;  %v1695_v30 = vld [vmem:[%s3562_s13 + $0x20] sm:$0xff] }
 0x12d   :  { %2319 = vmatmul.mubr.msk.f32.gmra.mrb[2].mxu1 %vm619_vm4, %v3163_v21 }
 0x12e   :  { %2496 = vmatpush3.bf16.msra.mxu1 %v2493_v9  ;;  %2337 = vmatprep.mubr.f32.mxu1 %v2640_v60  ;;  %v1562_v9 = vld [vmem:[%s3561_s9 + $0x80] sm:$0xff] }
 0x12f   :  { %2498 = vmatprep.subr.bf16.mxu1 %v2497_v22 }
 0x132   :  { %2500 = vmatpush3.bf16.msra.mxu1 %v2497_v22  ;;  %v1566_v22 = vld [vmem:[%s3561_s9 + $0xa0] sm:$0xff] }
 0x133   :  { %2502 = vmatprep.subr.bf16.mxu1 %v2501_v49 }
 0x136   :  { %2504 = vmatpush3.bf16.msra.mxu1 %v2501_v49  ;;  %v1573_v49 = vld [vmem:[%s3561_s9 + $0xd8] sm:$0xff] }
 0x137   :  { %2506 = vmatprep.subr.bf16.mxu1 %v2505_v37  ;;  %v2561_v35 = vpack.c.bf16 %v1573_v49, %v1571_v34  ;;  %v1697_v49 = vld [vmem:[%s3562_s13 + $0x30] sm:$0xff] }
 0x139   :  { %2338 = vmatmul.mubr.msk.f32.vlgmr.msra.gmra.mrb[0].mxu1 %vm619_vm4, %v3124_v47 }
 0x13a   :  { %2508 = vmatpush3.bf16.msra.mxu1 %v2505_v37  ;;  %2340 = vmatprep.mubr.f32.mxu1 %v2640_v60  ;;  %v1934_v60 = vld [vmem:[%s3557_s5 + $0x200] sm:$0xff]  ;;  %v1572_v37 = vld [vmem:[%s3561_s9 + $0xd0] sm:$0xff] }
 0x13b   :  { %2510 = vmatprep.subr.bf16.mxu1 %v2509_v40  ;;  %v2521_v50 = vpack.c.bf16 %v1935_v48, %v1934_v60  ;;  %v2563_v38 = vpack.c.bf16 %v1572_v37, %v1570_v36  ;;  %v1715_v36 = vld [vmem:[%s3562_s13 + $0xc0] sm:$0xff]  ;;  %v1716_v37 = vld [vmem:[%s3562_s13 + $0xc8] sm:$0xff] }
 0x13d   :  { %2341 = vmatmul.mubr.msk.f32.gmra.mrb[2].mxu1 %vm619_vm4, %v3229_v20 }
 0x13e   :  { %2512 = vmatpush3.bf16.msra.mxu1 %v2509_v40  ;;  %2359 = vmatprep.mubr.msk.f32.mxu1 %vm619_vm4, %v3124_v47  ;;  %v1937_v47 = vld [vmem:[%s3557_s5 + $0x218] sm:$0xff] }
 0x13f   :  { %2514 = vmatprep.subr.bf16.mxu1 %v2513_v43  ;;  %v2525_v52 = vpack.c.bf16 %v1937_v47, %v1936_v51  ;;  %v1577_v40 = vld [vmem:[%s3561_s9 + $0xf8] sm:$0xff]  ;;  %v1946_v47 = vld [vmem:[%s3563_s6] ss:$0 sm:$0xff] }
 0x140   :  { %v2565_v41 = vpack.c.bf16 %v1577_v40, %v1575_v39  ;;  %v2585_v39 = vpack.c.bf16 %v1716_v37, %v1715_v36  ;;  %v1699_v40 = vld [vmem:[%s3562_s13 + $0x40] sm:$0xff] }
 0x142   :  { %2516 = vmatpush3.bf16.msra.mxu1 %v2513_v43  ;;  %v1576_v43 = vld [vmem:[%s3561_s9 + $0xf0] sm:$0xff] }
 0x143   :  { %2518 = vmatprep.subr.bf16.mxu1 %v2517_v46  ;;  %v2567_v44 = vpack.c.bf16 %v1576_v43, %v1574_v42  ;;  %v1717_v42 = vld [vmem:[%s3562_s13 + $0xd0] sm:$0xff]  ;;  %v1718_v43 = vld [vmem:[%s3562_s13 + $0xd8] sm:$0xff] }
 0x146   :  { %2520 = vmatpush3.bf16.msra.mxu1 %v2517_v46  ;;  %v1708_v46 = vld [vmem:[%s3562_s13 + $0x88] sm:$0xff] }
 0x147   :  { %2522 = vmatprep.subr.bf16.mxu1 %v2521_v50  ;;  %v2569_v60 = vpack.c.bf16 %v1708_v46, %v1707_v45  ;;  %v2589_v45 = vpack.c.bf16 %v1718_v43, %v1717_v42  ;;  %v1701_v46 = vld [vmem:[%s3562_s13 + $0x50] sm:$0xff] }
 0x149   :  { %2360 = vmatmul.mubr.msk.f32.vlgmr.msra.gmra.mrb[0].mxu1 %vm619_vm4, %v3142_v63 }
 0x14a   :  { %2362 = vmatprep.mubr.msk.f32.mxu1 %vm619_vm4, %v3229_v20  ;;  %2524 = vmatpush3.bf16.msra.mxu1 %v2521_v50  ;;  %v1561_v20 = vld [vmem:[%s3561_s9 + $0x78] sm:$0xff] }
 0x14b   :  { %2526 = vmatprep.subr.bf16.mxu1 %v2525_v52  ;;  %v2549_v23 = vpack.c.bf16 %v1561_v20, %v1559_v18  ;;  %v1692_v18 = vld [vmem:[%s3562_s13 + $0x8] sm:$0xff]  ;;  %v1709_v20 = vld [vmem:[%s3562_s13 + $0x90] sm:$0xff] }
 0x14d   :  { %2363 = vmatmul.mubr.msk.f32.gmra.mrb[2].mxu1 %vm619_vm4, %v3241_v11 }
 0x14e   :  { %2528 = vmatpush3.bf16.msra.mxu1 %v2525_v52  ;;  %2381 = vmatprep.mubr.msk.f32.mxu1 %vm619_vm4, %v3142_v63  ;;  %v1551_v63 = vld [vmem:[%s3561_s9 + $0x28] sm:$0xff] }
 0x14f   :  { %2530 = vmatprep.subr.bf16.mxu1 %v2529_v57  ;;  %v2541_v17 = vpack.c.bf16 %v1553_v3, %v1551_v63 }
 0x151   :  { %2542 = vmatprep.subr.bf16.mxu0 %v2541_v17 }
 0x152   :  { %2532 = vmatpush3.bf16.msra.mxu1 %v2529_v57  ;;  %2544 = vmatpush1.bf16.msra.mxu0 %v2543_v6 }
 0x153   :  { %2534 = vmatprep.subr.bf16.mxu1 %v2533_v0  ;;  %2546 = vmatprep.subr.bf16.mxu0 %v2545_v10 }
 0x156   :  { %2536 = vmatpush3.bf16.msra.mxu1 %v2533_v0  ;;  %2548 = vmatpush1.bf16.msra.mxu0 %v2547_v16  ;;  %v1691_v16 = vld [vmem:[%s3562_s13] sm:$0xff] }
 0x157   :  { %2550 = vmatprep.subr.bf16.mxu0 %v2549_v23  ;;  %v1710_v23 = vld [vmem:[%s3562_s13 + $0x98] sm:$0xff] }
 0x158   :  { %v2573_v26 = vpack.c.bf16 %v1710_v23, %v1709_v20 }
 0x159   :  { %2382 = vmatmul.mubr.msk.f32.vlgmr.msra.gmra.mrb[0].mxu1 %vm619_vm4, %v3163_v21  ;;  %v1558_v21 = vld [vmem:[%s3561_s9 + $0x60] sm:$0xff] }
 0x15a   :  { %2384 = vmatprep.mubr.msk.f32.mxu1 %vm619_vm4, %v3241_v11  ;;  %v2551_v15 = vpack.c.bf16 %v1560_v24, %v1558_v21  ;;  %v2555_v11 = vpack.c.bf16 %v1564_v29, %v1562_v9  ;;  %v2571_v24 = vpack.c.bf16 %v1692_v18, %v1691_v16  ;;  %v1711_v9 = vld [vmem:[%s3562_s13 + $0xa0] sm:$0xff]  ;;  %v1712_v29 = vld [vmem:[%s3562_s13 + $0xa8] sm:$0xff] }
 0x15b   :  { %v2577_v25 = vpack.c.bf16 %v1712_v29, %v1711_v9 }
 0x15c   :  { %2552 = vmatpush1.bf16.msra.mxu0 %v2551_v15 }
 0x15d   :  { %2385 = vmatmul.mubr.msk.f32.gmra.mrb[2].mxu1 %vm619_vm4, %v3253_v31  ;;  %2554 = vmatprep.subr.bf16.mxu0 %v2553_v28  ;;  %v1568_v31 = vld [vmem:[%s3561_s9 + $0xb0] sm:$0xff]  ;;  %v1694_v28 = vld [vmem:[%s3562_s13 + $0x18] sm:$0xff] }
 0x15e   :  { %v2559_v33 = vpack.c.bf16 %v1568_v31, %v1566_v22  ;;  %v1713_v22 = vld [vmem:[%s3562_s13 + $0xb0] sm:$0xff]  ;;  %v1714_v31 = vld [vmem:[%s3562_s13 + $0xb8] sm:$0xff] }
 0x15f   :  { %v2581_v34 = vpack.c.bf16 %v1714_v31, %v1713_v22 }
 0x160   :  { %2556 = vmatpush1.bf16.msra.mxu0 %v2555_v11  ;;  %v2575_v11 = vpack.c.bf16 %v1694_v28, %v1693_v27  ;;  %v1949_v27 = vld [vmem:[%s3569_s14] ss:$0 sm:$0xff] }
 0x161   :  { %2558 = vmatprep.subr.bf16.mxu0 %v2557_v19  ;;  %v1696_v19 = vld [vmem:[%s3562_s13 + $0x28] sm:$0xff] }
 0x164   :  { %2560 = vmatpush1.bf16.msra.mxu0 %v2559_v33  ;;  %v2579_v33 = vpack.c.bf16 %v1696_v19, %v1695_v30 }
 0x165   :  { %2562 = vmatprep.subr.bf16.mxu0 %v2561_v35  ;;  %v1698_v35 = vld [vmem:[%s3562_s13 + $0x38] sm:$0xff] }
 0x168   :  { %2564 = vmatpush1.bf16.msra.mxu0 %v2563_v38  ;;  %v2583_v38 = vpack.c.bf16 %v1698_v35, %v1697_v49 }
 0x169   :  { %2566 = vmatprep.subr.bf16.mxu0 %v2565_v41  ;;  %v1700_v41 = vld [vmem:[%s3562_s13 + $0x48] sm:$0xff] }
 0x16c   :  { %2568 = vmatpush1.bf16.msra.mxu0 %v2567_v44  ;;  %v2587_v44 = vpack.c.bf16 %v1700_v41, %v1699_v40 }
 0x16d   :  { %2570 = vmatprep.subr.bf16.mxu0 %v2569_v60  ;;  %v1702_v60 = vld [vmem:[%s3562_s13 + $0x58] sm:$0xff] }
 0x1cc   :  { %v2210_v48 = vpop.f32.mrb[38].mxu0 }
 0x1cd   :  { %v705_v50 = vpop.f32.mrb[39].mxu0 }
 0x22c   :  { %v2383_v51 = vpop.f32.mrb[0].mxu1 }
 0x22d   :  { %v2601_v52 = vadd.f32 %v2383_v51, %v3307_v14  ;;  %v1483_v53 = vpop.f32.mrb[1].mxu1  ;;  %v1720_v51 = vld [vmem:[%s3562_s13 + $0xe8] sm:$0xff] }
 0x22e   :  { %v2602_v54 = vadd.f32 %v1483_v53, %v3315_v56  ;;  %v1704_v53 = vld [vmem:[%s3562_s13 + $0x68] sm:$0xff] }
 0x22f   :  { %v1514_v57 = vadd.f32 %v2601_v52, %v1946_v47  ;;  %v1703_v52 = vld [vmem:[%s3562_s13 + $0x60] sm:$0xff] }
 0x230   :  { %v1513_v58 = vadd.f32 %v2602_v54, %v1946_v47  ;;  %v2386_v59 = vpop.f32.mrb[2].mxu1  ;;  %v2595_v54 = vpack.c.bf16 %v1704_v53, %v1703_v52 }
 0x231   :  { %v1518_v61 = vmax.f32 %v1514_v57, 0.0  ;;  %v2603_v62 = vadd.f32 %v2386_v59, %v2210_v48  ;;  %v1493_v0 = vpop.f32.mrb[3].mxu1  ;;  %v2591_v48 = vpack.c.bf16 %v1702_v60, %v1701_v46  ;;  %v1721_v57 = vld [vmem:[%s3562_s13 + $0xf0] sm:$0xff] }
 0x232   :  { %v1517_v2 = vmax.f32 %v1513_v58, 0.0  ;;  %v2604_v63 = vadd.f32 %v1493_v0, %v705_v50  ;;  %v1719_v50 = vld [vmem:[%s3562_s13 + $0xe0] sm:$0xff]  ;;  %v1705_v59 = vld [vmem:[%s3562_s13 + $0x70] sm:$0xff]  ;;  %v1580_v0 = vlaneseq }
 0x233   :  { %v1529_v14 = vmul.f32 %v1947_v55, %v1518_v61  ;;  %v1516_v3 = vadd.f32 %v2603_v62, %v1946_v47  ;;  %v1706_v61 = vld [vmem:[%s3562_s13 + $0x78] sm:$0xff] }
 0x234   :  { %v1528_v4 = vmul.f32 %v1947_v55, %v1517_v2  ;;  %v1515_v56 = vadd.f32 %v2604_v63, %v1946_v47  ;;  %v2593_v47 = vpack.c.bf16 %v1720_v51, %v1719_v50  ;;  %v2599_v62 = vpack.c.bf16 %v1706_v61, %v1705_v59  ;;  %v1578_v63 = vld [vmem:[%s3566_s10] sm:$0x3] }
 0x235   :  { %v1540_v17 = vadd.f32 %v1948_v1, %v1529_v14  ;;  %v1520_v32 = vmax.f32 %v1516_v3, 0.0 }
 0x236   :  { %v1539_v5 = vadd.f32 %v1948_v1, %v1528_v4  ;;  %v1519_v7 = vmax.f32 %v1515_v56, 0.0  ;;  %v1663_v4 = vld [vmem:[%s3567_s11] sm:$0x3] }
 0x237   :  { %v1531_v8 = vmul.f32 %v1947_v55, %v1520_v32 }
 0x238   :  { %v1543_v6 = vmax.f32 %v1539_v5, %v1540_v17  ;;  %v1530_v10 = vmul.f32 %v1947_v55, %v1519_v7  ;;  %v1722_v55 = vld [vmem:[%s3562_s13 + $0xf8] sm:$0xff]  ;;  %v1677_v7 = vld [vmem:[%s3568_s12] sm:$0x3] }
 0x239   :  { %v1542_v12 = vadd.f32 %v1948_v1, %v1531_v8  ;;  %v2597_v58 = vpack.c.bf16 %v1722_v55, %v1721_v57 }
 0x23a   :  { %v1541_v13 = vadd.f32 %v1948_v1, %v1530_v10  ;;  %v1581_v1 = vshrl.u32 %v1580_v0, 7 }
 0x23c   :  { %v1544_v21 = vmax.f32 %v1541_v13, %v1542_v12  ;;  %v1582_v2 = vsub.s32 0, %v1581_v1  ;;  %v1586_v14 = vsub.s32 1, %v1581_v1 }
 0x23e   :  { %v1545_v15 = vmax.f32 %v1543_v6, %v1544_v21  ;;  %v1583_v3 = vrot.slane %v1578_v63, %v1582_v2  ;;  %v1587_v56 = vrot.slane %v1578_v63, %v1586_v14  ;;  %v1668_v5 = vrot.slane %v1663_v4, %v1582_v2 }
 0x23f   :  { %v1672_v10 = vrot.slane %v1663_v4, %v1586_v14  ;;  %v1686_v16 = vrot.slane %v1677_v7, %v1586_v14  ;;  %v1682_v20 = vrot.slane %v1677_v7, %v1582_v2 }
 0x240   :  { %1655 = vmatmul.mubr.f32.vlgmr.msra.gmra.mrb[40].mxu0 %v1545_v15 }
 0x241   :  { %2572 = vmatpush3.bf16.msra.mxu0 %v2571_v24 }
 0x242   :  { %2574 = vmatprep.subr.bf16.mxu0 %v2573_v26 }
 0x245   :  { %2576 = vmatpush3.bf16.msra.mxu0 %v2575_v11 }
 0x246   :  { %2578 = vmatprep.subr.bf16.mxu0 %v2577_v25 }
 0x249   :  { %2580 = vmatpush3.bf16.msra.mxu0 %v2579_v33 }
 0x24a   :  { %2582 = vmatprep.subr.bf16.mxu0 %v2581_v34 }
 0x24d   :  { %2584 = vmatpush3.bf16.msra.mxu0 %v2583_v38 }
 0x24e   :  { %2586 = vmatprep.subr.bf16.mxu0 %v2585_v39 }
 0x251   :  { %2588 = vmatpush3.bf16.msra.mxu0 %v2587_v44 }
 0x252   :  { %2590 = vmatprep.subr.bf16.mxu0 %v2589_v45 }
 0x255   :  { %2592 = vmatpush3.bf16.msra.mxu0 %v2591_v48 }
 0x256   :  { %2594 = vmatprep.subr.bf16.mxu0 %v2593_v47 }
 0x259   :  { %2596 = vmatpush3.bf16.msra.mxu0 %v2595_v54 }
 0x25a   :  { %2598 = vmatprep.subr.bf16.mxu0 %v2597_v58 }
 0x25d   :  { %2600 = vmatpush3.bf16.msra.mxu0 %v2599_v62 }
 0x313   :  { %v1656_v17 = vpop.f32.mrb[40].mxu0 }
 0x314   :  { %v1657_v32 = vadd.f32 %v1656_v17, %v1583_v3  ;;  %v1658_v8 = vpop.f32.mrb[41].mxu0 }
 0x315   :  { %v1659_v6 = vadd.f32 %v1658_v8, %v1587_v56 }
 0x316   :  { %v1661_v12 = vmax.f32 %v1657_v32, 0.0 }
 0x317   :  { %v1662_v13 = vmax.f32 %v1659_v6, 0.0 }
 0x318   :  { %v1675_v18 = vmul.f32 %v1668_v5, %v1661_v12 }
 0x319   :  { %v1676_v23 = vmul.f32 %v1672_v10, %v1662_v13 }
 0x31a   :  { %v1689_v24 = vadd.f32 %v1682_v20, %v1675_v18 }
 0x31b   :  { %v1690_v21 = vadd.f32 %v1686_v16, %v1676_v23 }
 0x31d   :  { %1794 = vmatprep.mubr.f32.mxu0 %v1690_v21 }
 0x31e   :  { %1795 = vmatmul.mubr.f32.vlgmr.msra.gmra.mrb[42].mxu0 %v1689_v24 }
 0x3f1   :  { %v2128_v15 = vpop.f32.mrb[42].mxu0 }
 0x3f2   :  { %v2129_v26 = vpop.f32.mrb[43].mxu0 }
 0x3f3   :  { %v2130_v28 = vadd.f32 %v2129_v26, %v2128_v15 }
 0x3f5   :  { %v1797_v9 = vadd.f32 %v2130_v28, %v1949_v27 }
 0x3f7   :  { %1800 = vmax.xlane.f32.xlu0 %v1797_v9 }
 0x484   :  { %v1801_v29 = vpop.xlane.xlu0 %1800 }
 0x485   :  { %v1802_v11 = vsub.f32 %v1797_v9, %v1801_v29 }
 0x487   :  { %v1803_v25 = vmul.f32 1.442695, %v1802_v11 }
 0x489   :  { %2635 = vpow2.f32 %v1803_v25 }
 0x493   :  { %v2636_v30 = vpop.eup %2635 }
 0x494   :  { %1805 = vadd.xlane.f32.xlu0 %v2636_v30 }
 0x521   :  { %v1806_v19 = vpop.xlane.xlu0 %1805 }
 0x522   :  { %2637 = vrcp.f32 %v1806_v19 }
 0x52c   :  { %v2638_v22 = vpop.eup %2637 }
 0x52d   :  { %v1808_v31 = vmul.f32 %v2638_v22, %v1806_v19 }
 0x52f   :  { %v1809_v33 = vsub.f32 2.0, %v1808_v31 }
 0x531   :  { %v1810_v34 = vmul.f32 %v2638_v22, %v1809_v33 }
 0x533   :  { %v1811_v49 = vmul.f32 %v2636_v30, %v1810_v34 }
 0x535   :  { %1812 = vst [vmem:[%s3570_s15] sm:$0xff] %v1811_v49 }

</bundles_post_ra>
